<compile_context>
chip_gen: v6e
topology: v6e:2x2x1
jax: 0.10.0
libtpu: 0.0.40
codegen_flags: <defaults>
</compile_context>

<pallas_src>
import functools

import jax
import jax.numpy as jnp
from jax.experimental import pallas as pl
from jax.experimental.pallas import tpu as pltpu


# ------------------------------------------------------------------
# Fused TargetBlock kernel (one grid step == one batch block of Nb images)
# ------------------------------------------------------------------
def _target_block_kernel(xph_ref, w1_ref, s1_ref, b1_ref, w2_ref, s2_ref, b2_ref,
                         o_ref, *, stride, Nb, Ho, Wo, Cin, P):
    s = stride
    M = Nb * Ho * Wo

    # Input block (Nb, s*s, Hp, Wp, Cin) arrives in bf16; upcast once, keep f32 math.
    xall = xph_ref[...].astype(jnp.float32)
    phases = [xall[:, p] for p in range(s * s)]              # each (Nb, Hp, Wp, Cin)

    # ---- conv1 (3x3, stride s, pad 1): 9 taps stacked along K -> ONE matmul ----
    taps1 = []
    for dh in range(3):
        for dw in range(3):
            ph = (dh % s) * s + (dw % s)
            r0, c0 = dh // s, dw // s
            taps1.append(phases[ph][:, r0:r0 + Ho, c0:c0 + Wo, :])
    patch1 = jnp.concatenate(taps1, axis=-1).reshape(M, 9 * Cin)
    acc1 = jnp.dot(patch1.astype(jnp.bfloat16), w1_ref[...],
                   preferred_element_type=jnp.float32)
    # ReLU(BN1(softalpha1 * conv1)): per-channel scale/bias stays in the f32 epilogue.
    h1 = jnp.maximum(acc1 * s1_ref[...] + b1_ref[...], 0.0)

    # ---- conv2 (3x3, stride 1, pad 1): zero-pad h1 in registers, one matmul ----
    h1_4d = h1.reshape(Nb, Ho, Wo, P)
    zrow = jnp.zeros((Nb, 1, Wo, P), jnp.float32)
    hp = jnp.concatenate([zrow, h1_4d, zrow], axis=1)         # (Nb, Ho+2, Wo, P)
    zcol = jnp.zeros((Nb, Ho + 2, 1, P), jnp.float32)
    hp = jnp.concatenate([zcol, hp, zcol], axis=2)            # (Nb, Ho+2, Wo+2, P)
    taps2 = [hp[:, dh:dh + Ho, dw:dw + Wo, :]
             for dh in range(3) for dw in range(3)]
    patch2 = jnp.concatenate(taps2, axis=-1).reshape(M, 9 * P)
    acc2 = jnp.dot(patch2.astype(jnp.bfloat16), w2_ref[...],
                   preferred_element_type=jnp.float32)
    acc2 = acc2 * s2_ref[...] + b2_ref[...]                   # BN2 (softalpha2 folded)

    # ---- shortcut: identity, or option-A ::2 subsample + zero channel-pad (VPU) ----
    off = 1 // s
    scp = (1 % s) * s + (1 % s)
    sc = phases[scp][:, off:off + Ho, off:off + Wo, :].reshape(M, Cin)
    if Cin == P:
        acc2 = acc2 + sc
    else:
        pad_lo = (P - Cin) // 2
        pad_hi = P - Cin - pad_lo
        acc2 = acc2 + jnp.concatenate(
            [jnp.zeros((M, pad_lo), jnp.float32), sc,
             jnp.zeros((M, pad_hi), jnp.float32)], axis=-1)

    out = jnp.maximum(acc2, 0.0)                              # final ReLU
    # Channel-major block (Nb, P, Ho*Wo): NCHW in the wrapper is a free reshape and
    # the HBM store is lane-dense whenever Ho*Wo >= 128.
    o_ref[...] = jnp.transpose(out.reshape(Nb, Ho * Wo, P), (0, 2, 1)).astype(o_ref.dtype)


# ------------------------------------------------------------------
# Wrapper: layout prep (bf16 first), batch blocking, pallas_call
# ------------------------------------------------------------------
def target_block_forward(x_nchw, params, *, target_rows=512):
    """x_nchw: (N, Cin, H, W) float32 -> (N, P, Ho, Wo) float32 (NCHW, like PyTorch)."""
    s = int(params["stride"])
    w1, sc1, b1 = params["w1"], params["scale1"], params["bias1"]
    w2, sc2, b2 = params["w2"], params["scale2"], params["bias2"]
    N, Cin, H, W = x_nchw.shape
    P = w1.shape[-1]
    assert H % s == 0 and W % s == 0
    Ho = (H - 1) // s + 1
    Wo = (W - 1) // s + 1

    # Cast to bf16 BEFORE the layout passes (halves preprocessing HBM traffic), then
    # NCHW -> NHWC, pad=1 and split into s*s stride-phases so every conv tap (and the
    # option-A shortcut) is a contiguous static slice inside the kernel.
    x = jnp.transpose(x_nchw.astype(jnp.bfloat16), (0, 2, 3, 1))
    xpad = jnp.pad(x, ((0, 0), (1, 1), (1, 1), (0, 0)))
    if s == 1:
        xph = xpad[:, None]
    else:
        xph = jnp.stack([xpad[:, ph::s, pw::s, :]
                         for ph in range(s) for pw in range(s)], axis=1)
    s2, Hp, Wp = xph.shape[1], xph.shape[2], xph.shape[3]

    # Batch block: M = Nb*Ho*Wo ~ target_rows MXU rows per step, but keep >= 2 grid
    # steps when N >= 2 so both v7x TensorCores get work.  (At these sizes we stay
    # far below the 64 MiB v7x / 128 MiB v5e-v6e VMEM ceilings.)
    Nb = max(1, min(max(1, target_rows // (Ho * Wo)), N // 2))
    n_blocks = (N + Nb - 1) // Nb
    N_pad = n_blocks * Nb
    if N_pad != N:
        xph = jnp.pad(xph, ((0, N_pad - N),) + ((0, 0),) * (xph.ndim - 1))

    flops = 2 * N_pad * Ho * Wo * (9 * Cin * P + 9 * P * P + Cin)
    bytes_accessed = (N_pad * s2 * Hp * Wp * Cin * 2 + N_pad * P * Ho * Wo * 4
                      + (9 * Cin * P + 9 * P * P) * 2 + 4 * P * 4)

    kernel = functools.partial(_target_block_kernel, stride=s, Nb=Nb,
                               Ho=Ho, Wo=Wo, Cin=Cin, P=P)
    out = pl.pallas_call(
        kernel,
        out_shape=jax.ShapeDtypeStruct((N_pad, P, Ho * Wo), jnp.float32),
        grid=(n_blocks,),
        in_specs=[
            pl.BlockSpec((Nb, s2, Hp, Wp, Cin), lambda n: (n, 0, 0, 0, 0)),
            pl.BlockSpec((9 * Cin, P), lambda n: (0, 0)),
            pl.BlockSpec((1, P), lambda n: (0, 0)),
            pl.BlockSpec((1, P), lambda n: (0, 0)),
            pl.BlockSpec((9 * P, P), lambda n: (0, 0)),
            pl.BlockSpec((1, P), lambda n: (0, 0)),
            pl.BlockSpec((1, P), lambda n: (0, 0)),
        ],
        out_specs=pl.BlockSpec((Nb, P, Ho * Wo), lambda n: (n, 0, 0)),
        compiler_params=pltpu.CompilerParams(dimension_semantics=("parallel",)),
        cost_estimate=pl.CostEstimate(flops=flops, transcendentals=0,
                                      bytes_accessed=bytes_accessed),
    )(xph, w1, sc1, b1, w2, sc2, b2)

    # Channel-major kernel output -> NCHW is a free reshape (no HBM transpose pass).
    return out[:N].reshape(N, P, Ho, Wo)


# ------------------------------------------------------------------
# Parameter preparation (constant folding done once, outside the hot path)
# ------------------------------------------------------------------
def init_target_block_params(key, in_planes, planes, stride):
    k1, k2, ka1, ka2 = jax.random.split(key, 4)

    def kaiming(k, cin, cout):
        fan_in = 9 * cin
        return jax.random.normal(k, (3, 3, cin, cout), jnp.float32) * (2.0 / fan_in) ** 0.5

    # TODO(synk): real PyTorch conv weights are (cout, cin, kh, kw); importing them
    # needs a transpose to (2, 3, 1, 0) before the (9*cin, cout) reshape below.
    w1 = kaiming(k1, in_planes, planes)
    w2 = kaiming(k2, planes, planes)
    alpha1 = jax.random.uniform(ka1, (planes,), jnp.float32)     # torch.rand init
    alpha2 = jax.random.uniform(ka2, (planes,), jnp.float32)

    def scale_bias(alpha, gamma, beta, mean, var, eps=1e-5):
        # Prune == 2: pruned (alpha == 0) channels keep scale 0, the rest take the
        # full softmax over all channels — exactly the PyTorch reference behaviour.
        soft = jnp.where(alpha != 0, jax.nn.softmax(alpha), alpha)
        bn_s = gamma * jax.lax.rsqrt(var + eps)
        scale = (soft * bn_s).reshape(1, -1).astype(jnp.float32)
        bias = (beta - mean * bn_s).reshape(1, -1).astype(jnp.float32)
        return scale, bias

    # Eval-mode BatchNorm with identity running stats (gamma=1, beta=0, mean=0, var=1).
    ones = jnp.ones((planes,), jnp.float32)
    zeros = jnp.zeros((planes,), jnp.float32)
    s1, b1 = scale_bias(alpha1, ones, zeros, zeros, ones)
    s2, b2 = scale_bias(alpha2, ones, zeros, zeros, ones)

    if stride != 1 or in_planes != planes:
        assert stride == 2 and in_planes + 2 * (planes // 4) == planes, \
            "option-A shortcut expects stride 2 and in_planes == planes // 2"

    return {"w1": w1.reshape(9 * in_planes, planes).astype(jnp.bfloat16),
            "scale1": s1, "bias1": b1,
            "w2": w2.reshape(9 * planes, planes).astype(jnp.bfloat16),
            "scale2": s2, "bias2": b2,
            "stride": stride}


if __name__ == "__main__":
    key = jax.random.PRNGKey(0)
    pkey, xkey = jax.random.split(key)

    # Canonical transition TargetBlock: 16 -> 32 channels, stride 2, option-A shortcut.
    in_planes, planes, stride = 16, 32, 2
    params = init_target_block_params(pkey, in_planes, planes, stride)

    x = jax.random.normal(xkey, (2, in_planes, 16, 16), jnp.float32)   # NCHW
    fwd = jax.jit(lambda inp: target_block_forward(inp, params))
    out = fwd(x)
    jax.block_until_ready(out)
    assert out.shape == (2, planes, 8, 8), out.shape
    print("KERNEL_OK")
</pallas_src>

<mosaic_0001>
module attributes {stable_mosaic.version = 11 : i64} {
  func.func @_target_block_kernel(%arg0: i32, %arg1: memref<1x4x9x9x16xbf16, #tpu.memory_space<vmem>>, %arg2: memref<144x32xbf16, #tpu.memory_space<vmem>>, %arg3: memref<1x32xf32, #tpu.memory_space<vmem>>, %arg4: memref<1x32xf32, #tpu.memory_space<vmem>>, %arg5: memref<288x32xbf16, #tpu.memory_space<vmem>>, %arg6: memref<1x32xf32, #tpu.memory_space<vmem>>, %arg7: memref<1x32xf32, #tpu.memory_space<vmem>>, %arg8: memref<1x32x64xf32, #tpu.memory_space<vmem>>) attributes {dimension_semantics = [#tpu.dimension_semantics<parallel>], iteration_bounds = array<i64: 2>, scalar_prefetch = 0 : i64, scratch_operands = 0 : i64, tpu.core_type = #tpu.core_type<tc>, window_params = [{transform_indices = @transform_0, window_bounds = array<i64: 1, 4, 9, 9, 16>}, {pipeline_mode = #tpu.pipeline_mode<synchronous>, transform_indices = @transform_1, window_bounds = array<i64: 144, 32>}, {pipeline_mode = #tpu.pipeline_mode<synchronous>, transform_indices = @transform_2, window_bounds = array<i64: 1, 32>}, {pipeline_mode = #tpu.pipeline_mode<synchronous>, transform_indices = @transform_3, window_bounds = array<i64: 1, 32>}, {pipeline_mode = #tpu.pipeline_mode<synchronous>, transform_indices = @transform_4, window_bounds = array<i64: 288, 32>}, {pipeline_mode = #tpu.pipeline_mode<synchronous>, transform_indices = @transform_5, window_bounds = array<i64: 1, 32>}, {pipeline_mode = #tpu.pipeline_mode<synchronous>, transform_indices = @transform_6, window_bounds = array<i64: 1, 32>}, {transform_indices = @transform_7, window_bounds = array<i64: 1, 32, 64>}]} {
    %c0 = arith.constant 0 : index
    %c0_0 = arith.constant 0 : index
    %c0_1 = arith.constant 0 : index
    %c0_2 = arith.constant 0 : index
    %c0_3 = arith.constant 0 : index
    %0 = vector.load %arg1[%c0, %c0_0, %c0_1, %c0_2, %c0_3] : memref<1x4x9x9x16xbf16, #tpu.memory_space<vmem>>, vector<1x4x9x9x16xbf16>
    %1 = arith.extf %0 : vector<1x4x9x9x16xbf16> to vector<1x4x9x9x16xf32>
    %2 = vector.extract_strided_slice %1 {offsets = [0, 0, 0, 0, 0], sizes = [1, 1, 9, 9, 16], strides = [1, 1, 1, 1, 1]} : vector<1x4x9x9x16xf32> to vector<1x1x9x9x16xf32>
    %3 = vector.shape_cast %2 : vector<1x1x9x9x16xf32> to vector<1x9x9x16xf32>
    %4 = vector.extract_strided_slice %1 {offsets = [0, 1, 0, 0, 0], sizes = [1, 1, 9, 9, 16], strides = [1, 1, 1, 1, 1]} : vector<1x4x9x9x16xf32> to vector<1x1x9x9x16xf32>
    %5 = vector.shape_cast %4 : vector<1x1x9x9x16xf32> to vector<1x9x9x16xf32>
    %6 = vector.extract_strided_slice %1 {offsets = [0, 2, 0, 0, 0], sizes = [1, 1, 9, 9, 16], strides = [1, 1, 1, 1, 1]} : vector<1x4x9x9x16xf32> to vector<1x1x9x9x16xf32>
    %7 = vector.shape_cast %6 : vector<1x1x9x9x16xf32> to vector<1x9x9x16xf32>
    %8 = vector.extract_strided_slice %1 {offsets = [0, 3, 0, 0, 0], sizes = [1, 1, 9, 9, 16], strides = [1, 1, 1, 1, 1]} : vector<1x4x9x9x16xf32> to vector<1x1x9x9x16xf32>
    %9 = vector.shape_cast %8 : vector<1x1x9x9x16xf32> to vector<1x9x9x16xf32>
    %10 = vector.extract_strided_slice %3 {offsets = [0, 0, 0, 0], sizes = [1, 8, 8, 16], strides = [1, 1, 1, 1]} : vector<1x9x9x16xf32> to vector<1x8x8x16xf32>
    %11 = vector.extract_strided_slice %5 {offsets = [0, 0, 0, 0], sizes = [1, 8, 8, 16], strides = [1, 1, 1, 1]} : vector<1x9x9x16xf32> to vector<1x8x8x16xf32>
    %12 = vector.extract_strided_slice %3 {offsets = [0, 0, 1, 0], sizes = [1, 8, 8, 16], strides = [1, 1, 1, 1]} : vector<1x9x9x16xf32> to vector<1x8x8x16xf32>
    %13 = vector.extract_strided_slice %7 {offsets = [0, 0, 0, 0], sizes = [1, 8, 8, 16], strides = [1, 1, 1, 1]} : vector<1x9x9x16xf32> to vector<1x8x8x16xf32>
    %14 = vector.extract_strided_slice %9 {offsets = [0, 0, 0, 0], sizes = [1, 8, 8, 16], strides = [1, 1, 1, 1]} : vector<1x9x9x16xf32> to vector<1x8x8x16xf32>
    %15 = vector.extract_strided_slice %7 {offsets = [0, 0, 1, 0], sizes = [1, 8, 8, 16], strides = [1, 1, 1, 1]} : vector<1x9x9x16xf32> to vector<1x8x8x16xf32>
    %16 = vector.extract_strided_slice %3 {offsets = [0, 1, 0, 0], sizes = [1, 8, 8, 16], strides = [1, 1, 1, 1]} : vector<1x9x9x16xf32> to vector<1x8x8x16xf32>
    %17 = vector.extract_strided_slice %5 {offsets = [0, 1, 0, 0], sizes = [1, 8, 8, 16], strides = [1, 1, 1, 1]} : vector<1x9x9x16xf32> to vector<1x8x8x16xf32>
    %18 = vector.extract_strided_slice %3 {offsets = [0, 1, 1, 0], sizes = [1, 8, 8, 16], strides = [1, 1, 1, 1]} : vector<1x9x9x16xf32> to vector<1x8x8x16xf32>
    %19 = tpu.concatenate %10, %11, %12, %13, %14, %15, %16, %17, %18 in 3 : vector<1x8x8x16xf32>, vector<1x8x8x16xf32>, vector<1x8x8x16xf32>, vector<1x8x8x16xf32>, vector<1x8x8x16xf32>, vector<1x8x8x16xf32>, vector<1x8x8x16xf32>, vector<1x8x8x16xf32>, vector<1x8x8x16xf32> -> vector<1x8x8x144xf32>
    %20 = vector.shape_cast %19 : vector<1x8x8x144xf32> to vector<64x144xf32>
    %21 = arith.truncf %20 : vector<64x144xf32> to vector<64x144xbf16>
    %c0_4 = arith.constant 0 : index
    %c0_5 = arith.constant 0 : index
    %22 = vector.load %arg2[%c0_4, %c0_5] : memref<144x32xbf16, #tpu.memory_space<vmem>>, vector<144x32xbf16>
    %cst = arith.constant dense<0.000000e+00> : vector<64x32xf32>
    %23 = tpu.matmul %21, %22, %cst {dimension_numbers = #tpu.dot_dimension_numbers<[1], [0], [0], [1], [0, 0, 1, 1], [], []>} : vector<64x144xbf16>, vector<144x32xbf16>, vector<64x32xf32> -> vector<64x32xf32>
    %c0_6 = arith.constant 0 : index
    %c0_7 = arith.constant 0 : index
    %24 = vector.load %arg3[%c0_6, %c0_7] : memref<1x32xf32, #tpu.memory_space<vmem>>, vector<1x32xf32>
    %25 = vector.broadcast %24 : vector<1x32xf32> to vector<64x32xf32>
    %26 = arith.mulf %23, %25 : vector<64x32xf32>
    %c0_8 = arith.constant 0 : index
    %c0_9 = arith.constant 0 : index
    %27 = vector.load %arg4[%c0_8, %c0_9] : memref<1x32xf32, #tpu.memory_space<vmem>>, vector<1x32xf32>
    %28 = vector.broadcast %27 : vector<1x32xf32> to vector<64x32xf32>
    %29 = arith.addf %26, %28 : vector<64x32xf32>
    %cst_10 = arith.constant 0.000000e+00 : f32
    %30 = vector.broadcast %cst_10 : f32 to vector<64x32xf32>
    %31 = arith.maximumf %29, %30 : vector<64x32xf32>
    %32 = vector.shape_cast %31 : vector<64x32xf32> to vector<1x8x8x32xf32>
    %cst_11 = arith.constant 0.000000e+00 : f32
    %33 = vector.broadcast %cst_11 : f32 to vector<1x1x8x32xf32>
    %34 = tpu.concatenate %33, %32, %33 in 1 : vector<1x1x8x32xf32>, vector<1x8x8x32xf32>, vector<1x1x8x32xf32> -> vector<1x10x8x32xf32>
    %cst_12 = arith.constant 0.000000e+00 : f32
    %35 = vector.broadcast %cst_12 : f32 to vector<1x10x1x32xf32>
    %36 = tpu.concatenate %35, %34, %35 in 2 : vector<1x10x1x32xf32>, vector<1x10x8x32xf32>, vector<1x10x1x32xf32> -> vector<1x10x10x32xf32>
    %37 = vector.extract_strided_slice %36 {offsets = [0, 0, 0, 0], sizes = [1, 8, 8, 32], strides = [1, 1, 1, 1]} : vector<1x10x10x32xf32> to vector<1x8x8x32xf32>
    %38 = vector.extract_strided_slice %36 {offsets = [0, 0, 1, 0], sizes = [1, 8, 8, 32], strides = [1, 1, 1, 1]} : vector<1x10x10x32xf32> to vector<1x8x8x32xf32>
    %39 = vector.extract_strided_slice %36 {offsets = [0, 0, 2, 0], sizes = [1, 8, 8, 32], strides = [1, 1, 1, 1]} : vector<1x10x10x32xf32> to vector<1x8x8x32xf32>
    %40 = vector.extract_strided_slice %36 {offsets = [0, 1, 0, 0], sizes = [1, 8, 8, 32], strides = [1, 1, 1, 1]} : vector<1x10x10x32xf32> to vector<1x8x8x32xf32>
    %41 = vector.extract_strided_slice %36 {offsets = [0, 1, 1, 0], sizes = [1, 8, 8, 32], strides = [1, 1, 1, 1]} : vector<1x10x10x32xf32> to vector<1x8x8x32xf32>
    %42 = vector.extract_strided_slice %36 {offsets = [0, 1, 2, 0], sizes = [1, 8, 8, 32], strides = [1, 1, 1, 1]} : vector<1x10x10x32xf32> to vector<1x8x8x32xf32>
    %43 = vector.extract_strided_slice %36 {offsets = [0, 2, 0, 0], sizes = [1, 8, 8, 32], strides = [1, 1, 1, 1]} : vector<1x10x10x32xf32> to vector<1x8x8x32xf32>
    %44 = vector.extract_strided_slice %36 {offsets = [0, 2, 1, 0], sizes = [1, 8, 8, 32], strides = [1, 1, 1, 1]} : vector<1x10x10x32xf32> to vector<1x8x8x32xf32>
    %45 = vector.extract_strided_slice %36 {offsets = [0, 2, 2, 0], sizes = [1, 8, 8, 32], strides = [1, 1, 1, 1]} : vector<1x10x10x32xf32> to vector<1x8x8x32xf32>
    %46 = tpu.concatenate %37, %38, %39, %40, %41, %42, %43, %44, %45 in 3 : vector<1x8x8x32xf32>, vector<1x8x8x32xf32>, vector<1x8x8x32xf32>, vector<1x8x8x32xf32>, vector<1x8x8x32xf32>, vector<1x8x8x32xf32>, vector<1x8x8x32xf32>, vector<1x8x8x32xf32>, vector<1x8x8x32xf32> -> vector<1x8x8x288xf32>
    %47 = vector.shape_cast %46 : vector<1x8x8x288xf32> to vector<64x288xf32>
    %48 = arith.truncf %47 : vector<64x288xf32> to vector<64x288xbf16>
    %c0_13 = arith.constant 0 : index
    %c0_14 = arith.constant 0 : index
    %49 = vector.load %arg5[%c0_13, %c0_14] : memref<288x32xbf16, #tpu.memory_space<vmem>>, vector<288x32xbf16>
    %cst_15 = arith.constant dense<0.000000e+00> : vector<64x32xf32>
    %50 = tpu.matmul %48, %49, %cst_15 {dimension_numbers = #tpu.dot_dimension_numbers<[1], [0], [0], [1], [0, 0, 1, 1], [], []>} : vector<64x288xbf16>, vector<288x32xbf16>, vector<64x32xf32> -> vector<64x32xf32>
    %c0_16 = arith.constant 0 : index
    %c0_17 = arith.constant 0 : index
    %51 = vector.load %arg6[%c0_16, %c0_17] : memref<1x32xf32, #tpu.memory_space<vmem>>, vector<1x32xf32>
    %52 = vector.broadcast %51 : vector<1x32xf32> to vector<64x32xf32>
    %53 = arith.mulf %50, %52 : vector<64x32xf32>
    %c0_18 = arith.constant 0 : index
    %c0_19 = arith.constant 0 : index
    %54 = vector.load %arg7[%c0_18, %c0_19] : memref<1x32xf32, #tpu.memory_space<vmem>>, vector<1x32xf32>
    %55 = vector.broadcast %54 : vector<1x32xf32> to vector<64x32xf32>
    %56 = arith.addf %53, %55 : vector<64x32xf32>
    %57 = vector.extract_strided_slice %9 {offsets = [0, 0, 0, 0], sizes = [1, 8, 8, 16], strides = [1, 1, 1, 1]} : vector<1x9x9x16xf32> to vector<1x8x8x16xf32>
    %58 = vector.shape_cast %57 : vector<1x8x8x16xf32> to vector<64x16xf32>
    %cst_20 = arith.constant 0.000000e+00 : f32
    %59 = vector.broadcast %cst_20 : f32 to vector<64x8xf32>
    %cst_21 = arith.constant 0.000000e+00 : f32
    %60 = vector.broadcast %cst_21 : f32 to vector<64x8xf32>
    %61 = tpu.concatenate %59, %58, %60 in 1 : vector<64x8xf32>, vector<64x16xf32>, vector<64x8xf32> -> vector<64x32xf32>
    %62 = arith.addf %56, %61 : vector<64x32xf32>
    %cst_22 = arith.constant 0.000000e+00 : f32
    %63 = vector.broadcast %cst_22 : f32 to vector<64x32xf32>
    %64 = arith.maximumf %62, %63 : vector<64x32xf32>
    %65 = vector.shape_cast %64 : vector<64x32xf32> to vector<1x64x32xf32>
    %66 = tpu.transpose %65, [0, 2, 1] : vector<1x64x32xf32> -> vector<1x32x64xf32>
    %c0_23 = arith.constant 0 : index
    %c0_24 = arith.constant 0 : index
    %c0_25 = arith.constant 0 : index
    %67 = vector.load %arg8[%c0_23, %c0_24, %c0_25] : memref<1x32x64xf32, #tpu.memory_space<vmem>>, vector<1x32x64xf32>
    tpu.vector_store %arg8[%c0_23, %c0_24, %c0_25], %66 {strides = array<i32>} : memref<1x32x64xf32, #tpu.memory_space<vmem>>, vector<1x32x64xf32>,
    return
  }
  func.func @transform_0(%arg0: i32) -> (i32, i32, i32, i32, i32) {
    %c0_i32 = arith.constant 0 : i32
    %c0_i32_0 = arith.constant 0 : i32
    %c0_i32_1 = arith.constant 0 : i32
    %c0_i32_2 = arith.constant 0 : i32
    %c0_i32_3 = arith.constant 0 : i32
    return %arg0, %c0_i32, %c0_i32_0, %c0_i32_1, %c0_i32_2 : i32, i32, i32, i32, i32
  }
  func.func @transform_1(%arg0: i32) -> (i32, i32) {
    %c0_i32 = arith.constant 0 : i32
    %c0_i32_0 = arith.constant 0 : i32
    %c0_i32_1 = arith.constant 0 : i32
    return %c0_i32, %c0_i32_0 : i32, i32
  }
  func.func @transform_2(%arg0: i32) -> (i32, i32) {
    %c0_i32 = arith.constant 0 : i32
    %c0_i32_0 = arith.constant 0 : i32
    %c0_i32_1 = arith.constant 0 : i32
    return %c0_i32, %c0_i32_0 : i32, i32
  }
  func.func @transform_3(%arg0: i32) -> (i32, i32) {
    %c0_i32 = arith.constant 0 : i32
    %c0_i32_0 = arith.constant 0 : i32
    %c0_i32_1 = arith.constant 0 : i32
    return %c0_i32, %c0_i32_0 : i32, i32
  }
  func.func @transform_4(%arg0: i32) -> (i32, i32) {
    %c0_i32 = arith.constant 0 : i32
    %c0_i32_0 = arith.constant 0 : i32
    %c0_i32_1 = arith.constant 0 : i32
    return %c0_i32, %c0_i32_0 : i32, i32
  }
  func.func @transform_5(%arg0: i32) -> (i32, i32) {
    %c0_i32 = arith.constant 0 : i32
    %c0_i32_0 = arith.constant 0 : i32
    %c0_i32_1 = arith.constant 0 : i32
    return %c0_i32, %c0_i32_0 : i32, i32
  }
  func.func @transform_6(%arg0: i32) -> (i32, i32) {
    %c0_i32 = arith.constant 0 : i32
    %c0_i32_0 = arith.constant 0 : i32
    %c0_i32_1 = arith.constant 0 : i32
    return %c0_i32, %c0_i32_0 : i32, i32
  }
  func.func @transform_7(%arg0: i32) -> (i32, i32, i32) {
    %c0_i32 = arith.constant 0 : i32
    %c0_i32_0 = arith.constant 0 : i32
    %c0_i32_1 = arith.constant 0 : i32
    return %arg0, %c0_i32, %c0_i32_0 : i32, i32, i32
  }
}

</mosaic_0001>

<bundles_post_ra>
// kernel: _lambda_.1
= control target key start
LH: loop header
LB: loop body
LE: loop exit
PB: predicated region body
PF: predicated region fallthrough
CT: control target
= control target key end

     0   :  { %s2199_s24 = smov 0   ;;  %s2940_s0 = inlined_call_operand.vmem [shape: bf16[2,4,9,9,16], index: 0, kind: input, shape index: {}]   ;;  %s2941_s1 = inlined_call_operand.vmem [shape: bf16[144,32], index: 1, kind: input, shape index: {}]   ;;  %s2942_s2 = inlined_call_operand.vmem [shape: f32[1,32], index: 2, kind: input, shape index: {}]   ;;  %s2943_s3 = inlined_call_operand.vmem [shape: f32[1,32], index: 3, kind: input, shape index: {}, may-alias: {3,6}]   ;;  %s2944_s4 = inlined_call_operand.vmem [shape: bf16[288,32], index: 4, kind: input, shape index: {}]   ;;  %s2945_s5 = inlined_call_operand.vmem [shape: f32[1,32], index: 5, kind: input, shape index: {}]   ;;  %s2946_s6 = inlined_call_operand.vmem [shape: f32[1,32], index: 6, kind: input, shape index: {}, may-alias: {3,6}]   ;;  %s2947_s7 = inlined_call_operand.vmem [shape: f32[2,32,64], index: 7, kind: output, shape index: {}]  }
   0x1 LB: > { %s1723_s25 = sadd.s32 4294967295, %s2147_s24   ;;  %p1727_p0 = scmp.ge.s32.totalorder %s2147_s24, 1  ;;  %s2147_s24 = sphi %s2199_s24, %s17_s24  }
   0x2   : > { %p237_p1 = scmp.lt.s32.totalorder %s2147_s24, 3 }
   0x4   : > { %p238_p2 = pnand %p1727_p0, %p237_p1 }
   0x5   : > { %p269_p3 = scmp.lt.s32.totalorder (!%p238_p2), %s1723_s25, 1  ;;  %s2150_s15 = smov (!%p238_p2), 16  }
   0x6   : > { %241 = sbr.rel (%p238_p2) target bundleno = 869 (0x365), region = 48  ;;  %s2151_s16 = smov (!%p238_p2), 48  }
   0x7   : > { %s2152_s19 = smov (!%p238_p2), 112   ;;  %s2153_s20 = smov (!%p238_p2), 64  }
   0x8   : > { %s2154_s23 = smov (!%p238_p2), 32   ;;  %s2155_s26 = smov (!%p238_p2), 96  }
   0x9   : > { %s2156_s29 = smov (!%p238_p2), 80  }
   0xb   : > { %v2149_v0 = vmov 0   ;;  %v2114_v1 = vld [vmem:[%s2941_s1 + $0x38] sm:$0xff]   ;;  %s2949_s25 = smov (!%p269_p3, %s1723_s25), 1  ;;  %v2115_v2 = vld [vmem:[%s2941_s1 + $0x30] sm:$0xff]   ;;  %v2116_v3 = vld [vmem:[%s2941_s1 + $0x28] sm:$0xff]   ;;  %vm430_vm0 = vcmask 1046528  }
   0xc   : > { %816 = vmatprep.subr.bf16.mxu0 %v2149_v0  ;;  %s1835_s30 = smul.u32 288, %s2949_s25  ;;  %v2117_v30 = vld [vmem:[%s2941_s1 + $0x20] sm:$0xff]   ;;  %v2118_v49 = vld [vmem:[%s2941_s1 + $0x18] sm:$0xff]   ;;  %vm661_vm1 = vcmask 130048   ;;  %vm670_vm2 = vcmask 261120   ;;  %vm679_vm3 = vcmask 392192  }
   0xd   : > { %817 = vmatpush1.bf16.msra.mxu0 %v2114_v1  ;;  %vm688_vm4 = vcmask 523264   ;;  %vm697_vm5 = vcmask 654336   ;;  %vm706_vm6 = vcmask 785408   ;;  %vm715_vm7 = vcmask 916480   ;;  %s1772_s17 = sshll.u32 %s2949_s25, 5 }
   0xe   : > { %818 = vmatprep.subr.bf16.mxu0 %v2149_v0  ;;  %s2224_s12 = scalar_lea.vmem %s2940_s0, %s1835_s30  ;;  %vm946_vm8 = vcmask 1040384   ;;  %vm1029_vm9 = vcmask 1045504   ;;  %vm1598_vm10 = vcmask 64512   ;;  %vm1607_vm11 = vcmask 195584   ;;  %s278_s21 = scalar_lea.vmem %s2947_s7, %s1772_s17 }
   0xf   : > { %v298_v4 = vld [vmem:[%s2224_s12 + $0x48] ss:$8 sps:$4 sm:$0xff]   ;;  %v2229_v6 = vld [vmem:[%s2224_s12 + $0x58] ss:$136 sps:$4 sm:$0xff]   ;;  %v281_v12 = vld [vmem:[%s2224_s12 + $0x4] sm:$0x1] }
  0x10   : > { %v307_v5 = vld [vmem:[%s2224_s12 + $0x90] ss:$8 sps:$4 sm:$0xff]   ;;  %v349_v7 = vunpack.c.l.bf16 %v298_v4  ;;  %v350_v8 = vunpack.c.h.bf16 %v298_v4  ;;  %v351_v14 = vunpack.c.l.bf16 %v2229_v6  ;;  %v375_v16 = vunpack.c.h.bf16 %v2229_v6  ;;  %v283_v17 = vld [vmem:[%s2224_s12 + $0xc] sm:$0x1]  ;;  %v308_v19 = vld [vmem:[%s2224_s12 + $0x94] sm:$0x1] }
  0x11   : > { %819 = vmatpush1.bf16.msra.mxu0 %v2115_v2  ;;  %v358_v9 = vunpack.c.l.bf16 %v307_v5  ;;  %v360_v10 = vunpack.c.h.bf16 %v307_v5  ;;  %v2232_v11 = vld [vmem:[%s2224_s12] ss:$216 sps:$4 sm:$0xff]   ;;  %v282_v13 = vld [vmem:[%s2224_s12 + $0x8] ss:$8 sps:$4 sm:$0xff]   ;;  %v310_v23 = vld [vmem:[%s2224_s12 + $0x9c] sm:$0x1]  ;;  %v332_v26 = vunpack.c.l.bf16 %v281_v12  ;;  %v334_v31 = vunpack.c.l.bf16 %v283_v17 }
  0x12   : > { %820 = vmatprep.subr.bf16.mxu0 %v2149_v0  ;;  %v374_v15 = vunpack.c.h.bf16 %v2232_v11  ;;  %v331_v18 = vunpack.c.l.bf16 %v2232_v11  ;;  %v1854_v20 = vpack.i.bf16 %v350_v8, %v349_v7  ;;  %v1874_v24 = vpack.i.bf16 %v351_v14, %v350_v8  ;;  %v2253_v28 = vld [vmem:[%s2224_s12 + $0x18] ss:$72 sps:$4 sm:$0xff]   ;;  %v285_v29 = vld [vmem:[%s2224_s12 + $0x14] sm:$0x1]  ;;  %v287_v39 = vld [vmem:[%s2224_s12 + $0x1c] sm:$0x1] }
  0x13   : > { %v1859_v21 = vpack.i.bf16 %v360_v10, %v358_v9  ;;  %v551_v22 = vrot.slane %v358_v9, 1  ;;  %v2250_v27 = vunpack.c.l.bf16 %v282_v13  ;;  %v2263_v33 = vunpack.c.h.bf16 %v282_v13  ;;  %v311_v48 = vld [vmem:[%s2224_s12 + $0xa0] ss:$8 sps:$4 sm:$0xff]   ;;  %v312_v54 = vld [vmem:[%s2224_s12 + $0xa4] sm:$0x1]  ;;  %v2119_v5 = vld [vmem:[%s2941_s1 + $0x10] sm:$0xff]  }
  0x14   : > { %v1864_v25 = vpack.i.bf16 %v375_v16, %v374_v15  ;;  %1855 = vrot.lane.b32.xlu0 %v1854_v20, %s2150_s15  ;;  %v431_v32 = vrot.slane %v331_v18, 1  ;;  %v359_v34 = vunpack.c.l.bf16 %v308_v19  ;;  %v554_v35 = vrot.slane %v360_v10, 1  ;;  %v2292_v62 = vld [vmem:[%s2224_s12 + $0xe8] ss:$8 sps:$4 sm:$0xff]   ;;  %v314_v63 = vld [vmem:[%s2224_s12 + $0xac] sm:$0x1] }
  0x15   : > { %821 = vmatpush1.bf16.msra.mxu0 %v2116_v3  ;;  %1860 = vrot.lane.b32.xlu1 %v1859_v21, %s2151_s16  ;;  %v432_v36 = vrot.slane %v332_v26, 1  ;;  %v434_v37 = vrot.slane %v2250_v27, 1  ;;  %v361_v38 = vunpack.c.l.bf16 %v310_v23  ;;  %v435_v40 = vrot.slane %v334_v31, 1  ;;  %v2300_v3 = vld [vmem:[%s2224_s12 + $0x20] ss:$72 sps:$4 sm:$0xff]  }
  0x16   : > { %822 = vmatprep.subr.bf16.mxu0 %v2149_v0  ;;  %v552_v41 = vrot.slane %v359_v34, 1  ;;  %v352_v42 = vunpack.c.h.bf16 %v2253_v28  ;;  %v336_v43 = vunpack.c.l.bf16 %v285_v29  ;;  %v1869_v45 = vpack.i.bf16 %v2263_v33, %v2250_v27  ;;  %v289_v4 = vld [vmem:[%s2224_s12 + $0x24] sm:$0x1]  ;;  %v2315_v10 = vld [vmem:[%s2224_s12 + $0x28] ss:$72 sps:$4 sm:$0xff]  }
  0x17   : > { %v433_v44 = vsel %vm430_vm0, %v431_v32, %v432_v36  ;;  %v555_v46 = vrot.slane %v361_v38, 1  ;;  %v2273_v47 = vunpack.c.l.bf16 %v2253_v28  ;;  %v2282_v50 = vsel %vm430_vm0, %v434_v37, %v435_v40  ;;  %v291_v12 = vld [vmem:[%s2224_s12 + $0x2c] sm:$0x1]  ;;  %v293_v37 = vld [vmem:[%s2224_s12 + $0x34] sm:$0x1]  ;;  %v2121_v38 = vld [vmem:[%s2941_s1] sm:$0xff]  }
  0x18   : > { %1875 = vrot.lane.b32.xlu0 %v1874_v24, %s2152_s19  ;;  %v553_v51 = vsel %vm430_vm0, %v551_v22, %v552_v41  ;;  %v338_v52 = vunpack.c.l.bf16 %v287_v39  ;;  %v437_v53 = vrot.slane %v2263_v33, 1  ;;  %v1884_v55 = vpack.i.bf16 %v2282_v50, %v433_v44  ;;  %v2120_v26 = vld [vmem:[%s2941_s1 + $0x8] sm:$0xff]   ;;  %v2344_v40 = vld [vmem:[%s2224_s12 + $0xb0] ss:$8 sps:$4 sm:$0xff]   ;;  %v295_v44 = vld [vmem:[%s2224_s12 + $0x3c] sm:$0x1] }
  0x19   : > { %823 = vmatpush1.bf16.msra.mxu0 %v2117_v30  ;;  %1865 = vrot.lane.b32.xlu1 %v1864_v25, %s2153_s20  ;;  %v556_v56 = vsel %vm430_vm0, %v554_v35, %v555_v46  ;;  %v438_v57 = vrot.slane %v336_v43, 1  ;;  %v440_v58 = vrot.slane %v2273_v47, 1  ;;  %v362_v60 = vunpack.c.l.bf16 %v311_v48  ;;  %v2347_v41 = vld [vmem:[%s2224_s12 + $0x30] ss:$72 sps:$4 sm:$0xff]   ;;  %v2122_v28 = vld [vmem:[%s2941_s1 + $0x40] sm:$0xff]  }
  0x1a   : > { %824 = vmatprep.subr.bf16.mxu0 %v2149_v0  ;;  %v441_v59 = vrot.slane %v338_v52, 1  ;;  %v364_v61 = vunpack.c.h.bf16 %v311_v48  ;;  %v1879_v1 = vpack.i.bf16 %v352_v42, %v351_v14  ;;  %v363_v2 = vunpack.c.l.bf16 %v312_v54  ;;  %v2350_v43 = vld [vmem:[%s2224_s12 + $0x38] ss:$72 sps:$4 sm:$0xff]   ;;  %v316_v48 = vld [vmem:[%s2224_s12 + $0xb4] sm:$0x1] }
  0x1b   : > { %v1889_v7 = vpack.i.bf16 %v556_v56, %v553_v51  ;;  %v2309_v8 = vsel %vm430_vm0, %v437_v53, %v438_v57  ;;  %v557_v14 = vrot.slane %v362_v60, 1  ;;  %v365_v17 = vunpack.c.l.bf16 %v314_v63  ;;  %v318_v54 = vld [vmem:[%s2224_s12 + $0xbc] sm:$0x1]  ;;  %v297_v56 = vld [vmem:[%s2224_s12 + $0x44] sm:$0x1] }
  0x1c   : > { %1885 = vrot.lane.b32.xlu0 %v1884_v55, %s2154_s23  ;;  %v2312_v9 = vsel %vm430_vm0, %v440_v58, %v441_v59  ;;  %v560_v13 = vrot.slane %v364_v61, 1  ;;  %v558_v19 = vrot.slane %v363_v2, 1  ;;  %v2320_v20 = vunpack.c.l.bf16 %v2300_v3  ;;  %v2368_v55 = vld [vmem:[%s2224_s12 + $0x40] ss:$136 sps:$4 sm:$0xff]  }
  0x1d   : > { %825 = vmatpush1.bf16.msra.mxu0 %v2118_v49  ;;  %1870 = vrot.lane.b32.xlu1 %v1869_v45, %s2155_s26  ;;  %v340_v21 = vunpack.c.l.bf16 %v289_v4  ;;  %v1899_v22 = vpack.i.bf16 %v364_v61, %v362_v60  ;;  %v376_v23 = vunpack.c.l.bf16 %v2292_v62  ;;  %v377_v24 = vunpack.c.h.bf16 %v2292_v62  ;;  %v2378_v60 = vld [vmem:[%s2224_s12 + $0xf8] ss:$8 sps:$4 sm:$0xff]  }
  0x1e   : > { %826 = vmatprep.subr.bf16.mxu0 %v2149_v0  ;;  %v561_v25 = vrot.slane %v365_v17, 1  ;;  %v1894_v29 = vpack.i.bf16 %v2312_v9, %v2309_v8  ;;  %v2332_v30 = vunpack.c.l.bf16 %v2315_v10  ;;  %v342_v31 = vunpack.c.l.bf16 %v291_v12 }
  0x1f   : > { %v443_v32 = vrot.slane %v2320_v20, 1  ;;  %v559_v34 = vsel %vm430_vm0, %v557_v14, %v558_v19  ;;  %v444_v36 = vrot.slane %v340_v21, 1  ;;  %v353_v39 = vunpack.c.h.bf16 %v2300_v3 }
  0x20   : > { %1890 = vrot.lane.b32.xlu0 %v1889_v7, %s2156_s29  ;;  %v562_v35 = vsel %vm430_vm0, %v560_v13, %v561_v25  ;;  %v1904_v45 = vpack.i.bf16 %v377_v24, %v376_v23  ;;  %v446_v51 = vrot.slane %v2332_v30, 1  ;;  %v447_v52 = vrot.slane %v342_v31, 1 }
  0x21   : > { %827 = vmatpush1.bf16.msra.mxu0 %v2119_v5  ;;  %1880 = vrot.lane.b32.xlu1 %v1879_v1, %s2150_s15  ;;  %v2358_v46 = vsel %vm430_vm0, %v443_v32, %v444_v36  ;;  %v1909_v49 = vpack.i.bf16 %v562_v35, %v559_v34  ;;  %v1914_v57 = vpack.i.bf16 %v2320_v20, %v2273_v47  ;;  %v354_v59 = vunpack.c.h.bf16 %v2315_v10 }
  0x22   : > { %828 = vmatprep.subr.bf16.mxu0 %v2149_v0  ;;  %v727_v53 = vpack.c.bf16 %v2358_v46, %v2312_v9  ;;  %v1919_v58 = vpack.i.bf16 %v353_v39, %v352_v42  ;;  %v344_v61 = vunpack.c.l.bf16 %v293_v37  ;;  %v366_v63 = vunpack.c.l.bf16 %v2344_v40 }
  0x23   : > { %v2382_v1 = vunpack.c.l.bf16 %v2347_v41  ;;  %v2385_v2 = vunpack.c.l.bf16 %v2350_v43  ;;  %v346_v3 = vunpack.c.l.bf16 %v295_v44  ;;  %v2393_v42 = vsel %vm430_vm0, %v446_v51, %v447_v52 }
  0x24   : > { %1895 = vrot.lane.b32.xlu0 %v1894_v29, %s2154_s23  ;;  %v368_v4 = vunpack.c.h.bf16 %v2344_v40  ;;  %v367_v5 = vunpack.c.l.bf16 %v316_v48  ;;  %v347_v7 = vunpack.c.l.bf16 %v2368_v55  ;;  %v369_v12 = vunpack.c.l.bf16 %v318_v54  ;;  %v2434_v54 = vld [vmem:[%s2224_s12 + $0xc0] ss:$72 sps:$4 sm:$0xff]  }
  0x25   : > { %829 = vmatpush1.bf16.msra.mxu0 %v2120_v26  ;;  %1900 = vrot.lane.b32.xlu1 %v1899_v22, %s2151_s16  ;;  %v348_v13 = vunpack.c.l.bf16 %v297_v56  ;;  %v449_v14 = vrot.slane %v2382_v1, 1  ;;  %v450_v17 = vrot.slane %v344_v61, 1  ;;  %v1924_v19 = vpack.i.bf16 %v354_v59, %v353_v39  ;;  %v320_v56 = vld [vmem:[%s2224_s12 + $0xc4] sm:$0x1] }
  0x26   : > { %830 = vmatprep.subr.bf16.mxu0 %v2149_v0  ;;  %v452_v21 = vrot.slane %v2385_v2, 1  ;;  %v453_v22 = vrot.slane %v346_v3, 1  ;;  %v650_v25 = vrot.slane %v347_v7, 1  ;;  %v378_v26 = vunpack.c.l.bf16 %v2378_v60 }
  0x27   : > { %v379_v29 = vunpack.c.h.bf16 %v2378_v60  ;;  %v2407_v31 = vsel %vm430_vm0, %v449_v14, %v450_v17  ;;  %v651_v32 = vrot.slane %v348_v13, 1  ;;  %v566_v34 = vrot.slane %v368_v4, 1  ;;  %v2452_v17 = vld [vmem:[%s2224_s12 + $0x88] ss:$136 sps:$4 sm:$0xff]  }
  0x28   : > { %1905 = vrot.lane.b32.xlu0 %v1904_v45, %s2153_s20  ;;  %v563_v35 = vrot.slane %v366_v63, 1  ;;  %v729_v36 = vpack.c.bf16 %v2407_v31, %v2393_v42  ;;  %v564_v37 = vrot.slane %v367_v5, 1  ;;  %v2416_v39 = vsel %vm430_vm0, %v452_v21, %v453_v22 }
  0x29   : > { %831 = vmatpush1.bf16.msra.mxu0 %v2121_v38  ;;  %1910 = vrot.lane.b32.xlu1 %v1909_v49, %s2156_s29  ;;  %v567_v38 = vrot.slane %v369_v12, 1  ;;  %v2419_v40 = vsel %vm430_vm0, %v650_v25, %v651_v32  ;;  %v1934_v45 = vpack.i.bf16 %v368_v4, %v366_v63  ;;  %v1939_v48 = vpack.i.bf16 %v379_v29, %v378_v26 }
  0x2a   : > { %846 = vmatprep.subr.bf16.mxu0 %v2149_v0  ;;  %v1929_v0 = vpack.i.bf16 %v2393_v42, %v2358_v46  ;;  %v731_v44 = vpack.c.bf16 %v2419_v40, %v2416_v39  ;;  %v565_v49 = vsel %vm430_vm0, %v563_v35, %v564_v37  ;;  %v725_v52 = vpack.c.bf16 %v2309_v8, %v2282_v50 }
  0x2b   : > { %v568_v51 = vsel %vm430_vm0, %v566_v34, %v567_v38  ;;  %v1949_v61 = vpack.i.bf16 %v2382_v1, %v2332_v30  ;;  %v355_v63 = vunpack.c.h.bf16 %v2347_v41  ;;  %v356_v3 = vunpack.c.h.bf16 %v2350_v43 }
  0x2c   : > { %1915 = vrot.lane.b32.xlu0 %v1914_v57, %s2155_s26  ;;  %v322_v57 = vld [vmem:[%s2224_s12 + $0xcc] sm:$0x1]  ;;  %1740 = vmatprep.mubr.msk.bf16.mxu0 %vm661_vm1, %v725_v52  ;;  %v370_v50 = vunpack.c.l.bf16 %v2434_v54  ;;  %v372_v8 = vunpack.c.h.bf16 %v2368_v55  ;;  %v380_v22 = vunpack.c.h.bf16 %v2434_v54  ;;  %v381_v10 = vunpack.c.h.bf16 %v2452_v17 }
  0x2d   : > { %847 = vmatpush2.bf16.msra.mxu0 %v2122_v28  ;;  %1920 = vrot.lane.b32.xlu1 %v1919_v58, %s2152_s19  ;;  %v1944_v58 = vpack.i.bf16 %v568_v51, %v565_v49  ;;  %v371_v28 = vunpack.c.l.bf16 %v320_v56  ;;  %v373_v4 = vunpack.c.l.bf16 %v322_v57  ;;  %v1954_v5 = vpack.i.bf16 %v355_v63, %v354_v59 }
  0x2e   : > { %v1959_v12 = vpack.i.bf16 %v356_v3, %v355_v63  ;;  %v572_v13 = vrot.slane %v372_v8, 1  ;;  %v569_v14 = vrot.slane %v370_v50, 1  ;;  %v1969_v21 = vpack.i.bf16 %v372_v8, %v370_v50 }
  0x2f   : > { %v570_v41 = vrot.slane %v371_v28, 1  ;;  %v573_v43 = vrot.slane %v373_v4, 1  ;;  %v1974_v32 = vpack.i.bf16 %v381_v10, %v380_v22  ;;  %v357_v34 = vunpack.c.l.bf16 %v2452_v17 }
  0x30   : > { %1925 = vrot.lane.b32.xlu0 %v1924_v19, %s2150_s15  ;;  %v1964_v19 = vpack.i.bf16 %v2416_v39, %v2407_v31  ;;  %v1984_v35 = vpack.i.bf16 %v347_v7, %v2385_v2 }
  0x31   : > { %1930 = vrot.lane.b32.xlu1 %v1929_v0, %s2154_s23  ;;  %v571_v59 = vsel %vm430_vm0, %v569_v14, %v570_v41  ;;  %v574_v25 = vsel %vm430_vm0, %v572_v13, %v573_v43  ;;  %v1989_v37 = vpack.i.bf16 %v357_v34, %v356_v3 }
  0x32   : > { %v1979_v0 = vpack.i.bf16 %v574_v25, %v571_v59 }
  0x34   : > { %1935 = vrot.lane.b32.xlu0 %v1934_v45, %s2151_s16 }
  0x35   : > { %1940 = vrot.lane.b32.xlu1 %v1939_v48, %s2153_s20 }
  0x38   : > { %1945 = vrot.lane.b32.xlu0 %v1944_v58, %s2156_s29 }
  0x39   : > { %1950 = vrot.lane.b32.xlu1 %v1949_v61, %s2155_s26 }
  0x3c   : > { %1955 = vrot.lane.b32.xlu0 %v1954_v5, %s2152_s19 }
  0x3d   : > { %1960 = vrot.lane.b32.xlu1 %v1959_v12, %s2150_s15  ;;  %s2158_s15 = smov 8  }
  0x40   : > { %1965 = vrot.lane.b32.xlu0 %v1964_v19, %s2154_s23 }
  0x41   : > { %1970 = vrot.lane.b32.xlu1 %v1969_v21, %s2151_s16 }
  0x44   : > { %1975 = vrot.lane.b32.xlu0 %v1974_v32, %s2153_s20 }
  0x45   : > { %1980 = vrot.lane.b32.xlu1 %v1979_v0, %s2156_s29 }
  0x48   : > { %1985 = vrot.lane.b32.xlu0 %v1984_v35, %s2155_s26 }
  0x49   : > { %1990 = vrot.lane.b32.xlu1 %v1989_v37, %s2152_s19 }
  0x86   : > { %v1856_v38 = vpop.permute.xlu0 %1855 }
  0x87   : > { %v1861_v45 = vpop.permute.xlu1 %1860  ;;  %v1858_v51 = vunpack.i.h.bf16 %v1856_v38  ;;  %v1857_v52 = vunpack.i.l.bf16 %v1856_v38 }
  0x88   : > { %v1863_v63 = vunpack.i.h.bf16 %v1861_v45  ;;  %v1862_v3 = vunpack.i.l.bf16 %v1861_v45 }
  0x89   : > { %v662_v55 = vsel %vm661_vm1, %v331_v18, %v1857_v52  ;;  %v663_v7 = vsel %vm661_vm1, %v2250_v27, %v1858_v51 }
  0x8a   : > { %v1876_v48 = vpop.permute.xlu0 %1875 }
  0x8b   : > { %v1866_v49 = vpop.permute.xlu1 %1865  ;;  %v1878_v34 = vunpack.i.h.bf16 %v1876_v48  ;;  %v1877_v35 = vunpack.i.l.bf16 %v1876_v48 }
  0x8c   : > { %v1868_v50 = vunpack.i.h.bf16 %v1866_v49  ;;  %v1867_v8 = vunpack.i.l.bf16 %v1866_v49 }
  0x8e   : > { %v1886_v56 = vpop.permute.xlu0 %1885 }
  0x8f   : > { %v1871_v57 = vpop.permute.xlu1 %1870  ;;  %v1888_v58 = vunpack.i.h.bf16 %v1886_v56  ;;  %v1887_v61 = vunpack.i.l.bf16 %v1886_v56 }
  0x90   : > { %v1873_v19 = vunpack.i.h.bf16 %v1871_v57  ;;  %v1872_v21 = vunpack.i.l.bf16 %v1871_v57 }
  0x91   : > { %v672_v28 = vsel %vm670_vm2, %v663_v7, %v1888_v58  ;;  %v671_v4 = vsel %vm670_vm2, %v662_v55, %v1887_v61 }
  0x92   : > { %v681_v5 = vsel %vm679_vm3, %v672_v28, %v1863_v63  ;;  %v680_v12 = vsel %vm679_vm3, %v671_v4, %v1862_v3  ;;  %v1891_v13 = vpop.permute.xlu0 %1890 }
  0x93   : > { %v1881_v14 = vpop.permute.xlu1 %1880  ;;  %v1893_v18 = vunpack.i.h.bf16 %v1891_v13  ;;  %v1892_v41 = vunpack.i.l.bf16 %v1891_v13  ;;  %v689_v27 = vsel %vm688_vm4, %v680_v12, %v1867_v8  ;;  %v690_v43 = vsel %vm688_vm4, %v681_v5, %v1868_v50 }
  0x94   : > { %v1883_v59 = vunpack.i.h.bf16 %v1881_v14  ;;  %v1882_v25 = vunpack.i.l.bf16 %v1881_v14 }
  0x95   : > { %v698_v32 = vsel %vm697_vm5, %v689_v27, %v1892_v41  ;;  %v699_v0 = vsel %vm697_vm5, %v690_v43, %v1893_v18 }
  0x96   : > { %v1896_v37 = vpop.permute.xlu0 %1895  ;;  %v707_v45 = vsel %vm706_vm6, %v698_v32, %v1872_v21  ;;  %v708_v49 = vsel %vm706_vm6, %v699_v0, %v1873_v19  ;;  %v665_v51 = vsel %vm661_vm1, %v2273_v47, %v1883_v59  ;;  %v664_v52 = vsel %vm661_vm1, %v2263_v33, %v1882_v25 }
  0x97   : > { %v1901_v38 = vpop.permute.xlu1 %1900  ;;  %v1898_v56 = vunpack.i.h.bf16 %v1896_v37  ;;  %v1897_v57 = vunpack.i.l.bf16 %v1896_v37  ;;  %v716_v55 = vsel %vm715_vm7, %v707_v45, %v1877_v35  ;;  %v717_v48 = vsel %vm715_vm7, %v708_v49, %v1878_v34 }
  0x98   : > { %v1903_v58 = vunpack.i.h.bf16 %v1901_v38  ;;  %v1902_v61 = vunpack.i.l.bf16 %v1901_v38  ;;  %v724_v3 = vpack.c.bf16 %v717_v48, %v716_v55 }
  0x99   : > { %v674_v7 = vsel %vm670_vm2, %v665_v51, %v1898_v56  ;;  %v673_v63 = vsel %vm670_vm2, %v664_v52, %v1897_v57 }
  0x9a   : > { %v1906_v50 = vpop.permute.xlu0 %1905  ;;  %849 = vmatmul.mubr.bf16.vlgmr.msra.gmra.mxu0 %v724_v3  ;;  %v682_v33 = vsel %vm679_vm3, %v673_v63, %v1902_v61  ;;  %v683_v4 = vsel %vm679_vm3, %v674_v7, %v1903_v58 }
  0x9b   : > { %v1911_v8 = vpop.permute.xlu1 %1910  ;;  %v1908_v28 = vunpack.i.h.bf16 %v1906_v50  ;;  %v1907_v47 = vunpack.i.l.bf16 %v1906_v50  ;;  %1741 = vmatprep.mubr.msk.bf16.mxu0 %vm661_vm1, %v727_v53 }
  0x9c   : > { %v1913_v5 = vunpack.i.h.bf16 %v1911_v8  ;;  %v1912_v12 = vunpack.i.l.bf16 %v1911_v8 }
  0x9d   : > { %v691_v13 = vsel %vm688_vm4, %v682_v33, %v1907_v47  ;;  %v692_v14 = vsel %vm688_vm4, %v683_v4, %v1908_v28 }
  0x9e   : > { %v1916_v18 = vpop.permute.xlu0 %1915  ;;  %v700_v59 = vsel %vm697_vm5, %v691_v13, %v1912_v12  ;;  %v701_v25 = vsel %vm697_vm5, %v692_v14, %v1913_v5 }
  0x9f   : > { %v1921_v41 = vpop.permute.xlu1 %1920  ;;  %v1918_v27 = vunpack.i.h.bf16 %v1916_v18  ;;  %v1917_v43 = vunpack.i.l.bf16 %v1916_v18 }
  0xa0   : > { %v1923_v19 = vunpack.i.h.bf16 %v1921_v41  ;;  %v1922_v21 = vunpack.i.l.bf16 %v1921_v41 }
  0xa1   : > { %v709_v32 = vsel %vm706_vm6, %v700_v59, %v1917_v43  ;;  %v710_v9 = vsel %vm706_vm6, %v701_v25, %v1918_v27 }
  0xa2   : > { %v1926_v46 = vpop.permute.xlu0 %1925  ;;  %v718_v0 = vsel %vm715_vm7, %v709_v32, %v1922_v21  ;;  %v719_v34 = vsel %vm715_vm7, %v710_v9, %v1923_v19 }
  0xa3   : > { %v1931_v53 = vpop.permute.xlu1 %1930  ;;  %v1928_v35 = vunpack.i.h.bf16 %v1926_v46  ;;  %v1927_v37 = vunpack.i.l.bf16 %v1926_v46  ;;  %v726_v49 = vpack.c.bf16 %v719_v34, %v718_v0 }
  0xa4   : > { %v1933_v38 = vunpack.i.h.bf16 %v1931_v53  ;;  %v1932_v45 = vunpack.i.l.bf16 %v1931_v53 }
  0xa5   : > { %v667_v51 = vsel %vm661_vm1, %v2332_v30, %v1928_v35  ;;  %v666_v52 = vsel %vm661_vm1, %v2320_v20, %v1927_v37  ;;  %857 = vmatmul.mubr.bf16.gmra.mxu0 %v726_v49 }
  0xa6   : > { %v1936_v56 = vpop.permute.xlu0 %1935  ;;  %1742 = vmatprep.mubr.msk.bf16.mxu0 %vm661_vm1, %v729_v36  ;;  %v675_v55 = vsel %vm670_vm2, %v666_v52, %v1932_v45  ;;  %v676_v48 = vsel %vm670_vm2, %v667_v51, %v1933_v38 }
  0xa7   : > { %v1941_v57 = vpop.permute.xlu1 %1940  ;;  %v1938_v58 = vunpack.i.h.bf16 %v1936_v56  ;;  %v1937_v61 = vunpack.i.l.bf16 %v1936_v56 }
  0xa8   : > { %v1943_v7 = vunpack.i.h.bf16 %v1941_v57  ;;  %v1942_v63 = vunpack.i.l.bf16 %v1941_v57 }
  0xa9   : > { %v684_v30 = vsel %vm679_vm3, %v675_v55, %v1937_v61  ;;  %v685_v20 = vsel %vm679_vm3, %v676_v48, %v1938_v58 }
  0xaa   : > { %v1946_v3 = vpop.permute.xlu0 %1945  ;;  %v693_v47 = vsel %vm688_vm4, %v684_v30, %v1942_v63  ;;  %v694_v42 = vsel %vm688_vm4, %v685_v20, %v1943_v7 }
  0xab   : > { %v1951_v50 = vpop.permute.xlu1 %1950  ;;  %v1948_v8 = vunpack.i.h.bf16 %v1946_v3  ;;  %v1947_v28 = vunpack.i.l.bf16 %v1946_v3 }
  0xac   : > { %v1953_v31 = vunpack.i.h.bf16 %v1951_v50  ;;  %v1952_v36 = vunpack.i.l.bf16 %v1951_v50 }
  0xad   : > { %v702_v33 = vsel %vm697_vm5, %v693_v47, %v1947_v28  ;;  %v703_v4 = vsel %vm697_vm5, %v694_v42, %v1948_v8  ;;  %v2556_v47 = vld [vmem:[%s2944_s4 + $0x88] sm:$0xff]   ;;  %v2563_v42 = vld [vmem:[%s2944_s4 + $0x80] sm:$0xff]  }
  0xae   : > { %v1956_v5 = vpop.permute.xlu0 %1955  ;;  %v711_v18 = vsel %vm706_vm6, %v702_v33, %v1952_v36  ;;  %v712_v41 = vsel %vm706_vm6, %v703_v4, %v1953_v31  ;;  %1819 = vmatprep.subr.bf16.mxu0 %v2556_v47  ;;  %v2125_v31 = vld [vmem:[%s2944_s4 + $0x78] sm:$0xff]   ;;  %v2127_v33 = vld [vmem:[%s2944_s4 + $0x70] sm:$0xff]  }
  0xaf   : > { %v1961_v12 = vpop.permute.xlu1 %1960  ;;  %v1958_v13 = vunpack.i.h.bf16 %v1956_v5  ;;  %v1957_v14 = vunpack.i.l.bf16 %v1956_v5  ;;  %1820 = vmatpush3.bf16.msra.mxu0 %v2556_v47  ;;  %v2126_v36 = vld [vmem:[%s2944_s4 + $0x38] sm:$0xff]   ;;  %1773 = vmatprep.subr.bf16.mxu1 %v2125_v31  ;;  %v2128_v4 = vld [vmem:[%s2944_s4 + $0x30] sm:$0xff]   ;;  %v2129_v5 = vld [vmem:[%s2944_s4 + $0x68] sm:$0xff]  }
  0xb0   : > { %v1963_v27 = vunpack.i.h.bf16 %v1961_v12  ;;  %v1962_v43 = vunpack.i.l.bf16 %v1961_v12  ;;  %1821 = vmatprep.subr.bf16.mxu0 %v2563_v42  ;;  %1774 = vmatpush3.bf16.msra.mxu1 %v2126_v36  ;;  %v2130_v12 = vld [vmem:[%s2944_s4 + $0x28] sm:$0xff]  }
  0xb1   : > { %v720_v19 = vsel %vm715_vm7, %v711_v18, %v1957_v14  ;;  %v721_v21 = vsel %vm715_vm7, %v712_v41, %v1958_v13  ;;  %1775 = vmatprep.subr.bf16.mxu1 %v2127_v33  ;;  %v2131_v13 = vld [vmem:[%s2944_s4 + $0x60] sm:$0xff]   ;;  %v2157_v41 = vmov 0.0  }
  0xb2   : > { %v1966_v59 = vpop.permute.xlu0 %1965  ;;  %v728_v32 = vpack.c.bf16 %v721_v21, %v720_v19  ;;  %v669_v53 = vsel %vm661_vm1, %v2385_v2, %v1963_v27  ;;  %v668_v0 = vsel %vm661_vm1, %v2382_v1, %v1962_v43  ;;  %v2132_v14 = vld [vmem:[%s2944_s4 + $0x20] sm:$0xff]   ;;  %v928_v27 = vrot.slane %v2157_v41, 7 }
  0xb3   : > { %v1971_v25 = vpop.permute.xlu1 %1970  ;;  %v1968_v9 = vunpack.i.h.bf16 %v1966_v59  ;;  %v1967_v46 = vunpack.i.l.bf16 %v1966_v59  ;;  %1822 = vmatpush3.bf16.msra.mxu0 %v2563_v42  ;;  %v2594_v18 = vld [vmem:[%s2942_s2] ss:$0 sm:$0xff] }
  0xb4   : > { %v1973_v34 = vunpack.i.h.bf16 %v1971_v25  ;;  %v1972_v35 = vunpack.i.l.bf16 %v1971_v25  ;;  %865 = vmatmul.mubr.bf16.gmra.mxu0 %v728_v32  ;;  %1776 = vmatpush3.bf16.msra.mxu1 %v2128_v4  ;;  %v2599_v19 = vld [vmem:[%s2943_s3] ss:$0 sm:$0xff]  ;;  %v2603_v25 = vsel %vm946_vm8, 0.0, %v928_v27  ;;  %v956_v32 = vsel %vm946_vm8, %v928_v27, 0.0 }
  0xb5   : > { %v678_v37 = vsel %vm670_vm2, %v669_v53, %v1968_v9  ;;  %v677_v38 = vsel %vm670_vm2, %v668_v0, %v1967_v46  ;;  %1743 = vmatprep.mubr.msk.bf16.mxu0 %vm661_vm1, %v731_v44  ;;  %1777 = vmatprep.subr.bf16.mxu1 %v2129_v5  ;;  %v2133_v53 = vld [vmem:[%s2944_s4 + $0x58] sm:$0xff]  }
  0xb6   : > { %v1976_v45 = vpop.permute.xlu0 %1975  ;;  %v686_v2 = vsel %vm679_vm3, %v677_v38, %v1972_v35  ;;  %v687_v1 = vsel %vm679_vm3, %v678_v37, %v1973_v34  ;;  %v2134_v0 = vld [vmem:[%s2944_s4 + $0x18] sm:$0xff]   ;;  %v981_v37 = vrot.slane %v2603_v25, 1  ;;  %v982_v38 = vrot.slane %v956_v32, 1 }
  0xb7   : > { %v1981_v49 = vpop.permute.xlu1 %1980  ;;  %v1978_v51 = vunpack.i.h.bf16 %v1976_v45  ;;  %v1977_v52 = vunpack.i.l.bf16 %v1976_v45 }
  0xb8   : > { %v1983_v56 = vunpack.i.h.bf16 %v1981_v49  ;;  %v1982_v57 = vunpack.i.l.bf16 %v1981_v49  ;;  %1778 = vmatpush3.bf16.msra.mxu1 %v2130_v12 }
  0xb9   : > { %v695_v58 = vsel %vm688_vm4, %v686_v2, %v1977_v52  ;;  %v696_v61 = vsel %vm688_vm4, %v687_v1, %v1978_v51  ;;  %1779 = vmatprep.subr.bf16.mxu1 %v2131_v13  ;;  %v1030_v52 = vrot.slane %v2603_v25, 2  ;;  %v1031_v2 = vrot.slane %v956_v32, 2  ;;  %v2135_v1 = vld [vmem:[%s2944_s4 + $0x50] sm:$0xff]  }
  0xba   : > { %v1986_v55 = vpop.permute.xlu0 %1985  ;;  %v704_v63 = vsel %vm697_vm5, %v695_v58, %v1982_v57  ;;  %v705_v30 = vsel %vm697_vm5, %v696_v61, %v1983_v56  ;;  %v2136_v56 = vld [vmem:[%s2944_s4 + $0x10] sm:$0xff]  }
  0xbb   : > { %v1991_v48 = vpop.permute.xlu1 %1990  ;;  %v1988_v7 = vunpack.i.h.bf16 %v1986_v55  ;;  %v1987_v39 = vunpack.i.l.bf16 %v1986_v55  ;;  %v2628_v55 = vsel %vm430_vm0, %v981_v37, %v982_v38  ;;  %v2649_v33 = vsel %vm1029_vm9, %v1030_v52, %v1031_v2 }
  0xbc   : > { %v1993_v40 = vunpack.i.h.bf16 %v1991_v48  ;;  %v1992_v44 = vunpack.i.l.bf16 %v1991_v48  ;;  %1780 = vmatpush3.bf16.msra.mxu1 %v2132_v14 }
  0xbd   : > { %v713_v20 = vsel %vm706_vm6, %v704_v63, %v1987_v39  ;;  %v714_v3 = vsel %vm706_vm6, %v705_v30, %v1988_v7  ;;  %1781 = vmatprep.subr.bf16.mxu1 %v2133_v53 }
  0xbe   : > { %v722_v50 = vsel %vm715_vm7, %v713_v20, %v1992_v44  ;;  %v723_v8 = vsel %vm715_vm7, %v714_v3, %v1993_v40  ;;  %v2137_v44 = vld [vmem:[%s2944_s4 + $0x48] sm:$0xff]  }
  0xbf   : > { %v730_v28 = vpack.c.bf16 %v723_v8, %v722_v50  ;;  %v2138_v20 = vld [vmem:[%s2944_s4 + $0x8] sm:$0xff]  }
  0xc0   : > { %1782 = vmatpush3.bf16.msra.mxu1 %v2134_v0 }
  0xc1   : > { %873 = vmatmul.mubr.bf16.gmra.mxu0 %v730_v28  ;;  %1783 = vmatprep.subr.bf16.mxu1 %v2135_v1 }
  0xc4   : > { %1784 = vmatpush3.bf16.msra.mxu1 %v2136_v56 }
  0xc5   : > { %1785 = vmatprep.subr.bf16.mxu1 %v2137_v44 }
  0xc8   : > { %1786 = vmatpush3.bf16.msra.mxu1 %v2138_v20 }
 0x15a   : > { %v850_v43 = vpop.f32.mrf.mxu0 }
 0x15b   : > { %v888_v21 = vmul.f32 %v2594_v18, %v850_v43 }
 0x15c   : > { %v852_v59 = vpop.f32.mrf.mxu0 }
 0x15d   : > { %v903_v9 = vadd.f32 %v2599_v19, %v888_v21  ;;  %v2139_v21 = vld [vmem:[%s2944_s4 + $0x40] sm:$0xff]  }
 0x15e   : > { %v853_v46 = vpop.f32.mrf.mxu0  ;;  %v2140_v59 = vld [vmem:[%s2944_s4] sm:$0xff]   ;;  %1787 = vmatprep.subr.bf16.mxu1 %v2139_v21 }
 0x15f   : > { %v911_v34 = vmax.f32 %v903_v9, 0.0  ;;  %v889_v35 = vmul.f32 %v2594_v18, %v853_v46  ;;  %1788 = vmatpush3.bf16.msra.mxu1 %v2140_v59 }
 0x160   : > { %v855_v45 = vpop.f32.mrf.mxu0  ;;  %1831 = vmatprep.subr.bf16.mxu1 %v2556_v47 }
 0x161   : > { %v929_v49 = vrot.slane %v911_v34, 7  ;;  %v904_v51 = vadd.f32 %v2599_v19, %v889_v35 }
 0x163   : > { %v2624_v57 = vsel %vm946_vm8, 0.0, %v929_v49  ;;  %v957_v58 = vsel %vm946_vm8, %v929_v49, 0.0  ;;  %v912_v61 = vmax.f32 %v904_v51, 0.0 }
 0x164   : > { %v985_v48 = vrot.slane %v957_v58, 1  ;;  %v1034_v7 = vrot.slane %v957_v58, 2  ;;  %v984_v39 = vrot.slane %v2624_v57, 1  ;;  %v1033_v40 = vrot.slane %v2624_v57, 2 }
 0x165   : > { %v930_v63 = vrot.slane %v912_v61, 7  ;;  %v858_v30 = vpop.f32.mrf.mxu0 }
 0x166   : > { %v890_v3 = vmul.f32 %v2594_v18, %v858_v30  ;;  %v2640_v50 = vsel %vm430_vm0, %v984_v39, %v985_v48  ;;  %v1035_v12 = vsel %vm1029_vm9, %v1033_v40, %v1034_v7 }
 0x167   : > { %v2643_v8 = vsel %vm946_vm8, 0.0, %v930_v63  ;;  %v958_v28 = vsel %vm946_vm8, %v930_v63, 0.0  ;;  %v860_v31 = vpop.f32.mrf.mxu0  ;;  %v1994_v36 = vpack.i.bf16 %v2640_v50, %v2628_v55  ;;  %v1999_v9 = vpack.i.bf16 %v1035_v12, %v2649_v33 }
 0x168   : > { %v1037_v4 = vrot.slane %v958_v28, 2  ;;  %v905_v5 = vadd.f32 %v2599_v19, %v890_v3  ;;  %v1036_v13 = vrot.slane %v2643_v8, 2  ;;  %v988_v34 = vrot.slane %v958_v28, 1 }
 0x169   : > { %1995 = vrot.lane.b32.xlu1 %v1994_v36, %s2154_s23  ;;  %v861_v14 = vpop.f32.mrf.mxu0  ;;  %v987_v35 = vrot.slane %v2643_v8, 1  ;;  %v2004_v49 = vpack.i.bf16 %v2643_v8, %v2624_v57 }
 0x16a   : > { %v913_v41 = vmax.f32 %v905_v5, 0.0  ;;  %v891_v27 = vmul.f32 %v2594_v18, %v861_v14  ;;  %v1038_v43 = vsel %vm1029_vm9, %v1036_v13, %v1037_v4 }
 0x16b   : > { %v863_v32 = vpop.f32.mrf.mxu0  ;;  %v2009_v46 = vpack.i.bf16 %v1038_v43, %v1035_v12  ;;  %v2683_v48 = vsel %vm430_vm0, %v987_v35, %v988_v34 }
 0x16c   : > { %v931_v53 = vrot.slane %v913_v41, 7  ;;  %v906_v0 = vadd.f32 %v2599_v19, %v891_v27 }
 0x16d   : > { %2000 = vrot.lane.b32.xlu1 %v1999_v9, %s2153_s20  ;;  %2010 = vrot.lane.b32.xlu0 %v2009_v46, %s2154_s23 }
 0x16e   : > { %v2669_v37 = vsel %vm946_vm8, 0.0, %v931_v53  ;;  %v959_v38 = vsel %vm946_vm8, %v931_v53, 0.0  ;;  %v914_v45 = vmax.f32 %v906_v0, 0.0 }
 0x16f   : > { %v991_v51 = vrot.slane %v959_v38, 1  ;;  %v1039_v52 = vrot.slane %v2669_v37, 2  ;;  %v1040_v2 = vrot.slane %v959_v38, 2  ;;  %v2014_v1 = vpack.i.bf16 %v2669_v37, %v2643_v8 }
 0x170   : > { %v932_v56 = vrot.slane %v914_v45, 7  ;;  %v990_v58 = vrot.slane %v2669_v37, 1 }
 0x171   : > { %2005 = vrot.lane.b32.xlu1 %v2004_v49, %s2155_s26  ;;  %2015 = vrot.lane.b32.xlu0 %v2014_v1, %s2153_s20  ;;  %v1041_v61 = vsel %vm1029_vm9, %v1039_v52, %v1040_v2 }
 0x172   : > { %v2686_v7 = vsel %vm946_vm8, 0.0, %v932_v56  ;;  %v960_v39 = vsel %vm946_vm8, %v932_v56, 0.0  ;;  %v1248_v40 = vpack.c.bf16 %v1041_v61, %v1038_v43  ;;  %v2690_v44 = vsel %vm430_vm0, %v990_v58, %v991_v51 }
 0x173   : > { %v1043_v63 = vrot.slane %v960_v39, 2  ;;  %v2024_v20 = vpack.i.bf16 %v2690_v44, %v2683_v48  ;;  %v1042_v28 = vrot.slane %v2686_v7, 2  ;;  %v2029_v12 = vpack.i.bf16 %v1041_v61, %v1038_v43 }
 0x174   : > { %v866_v30 = vpop.f32.mrf.mxu0  ;;  %1823 = vmatprep.mubr.msk.bf16.mxu0 %vm670_vm2, %v1248_v40  ;;  %v994_v32 = vrot.slane %v960_v39, 1  ;;  %v2034_v9 = vpack.i.bf16 %v2686_v7, %v2669_v37  ;;  %v993_v46 = vrot.slane %v2686_v7, 1 }
 0x175   : > { %v892_v3 = vmul.f32 %v2594_v18, %v866_v30  ;;  %2025 = vrot.lane.b32.xlu1 %v2024_v20, %s2154_s23  ;;  %2020 = vrot.lane.b32.xlu0 %v2024_v20, %s2155_s26  ;;  %v1044_v4 = vsel %vm1029_vm9, %v1042_v28, %v1043_v63 }
 0x176   : > { %v868_v31 = vpop.f32.mrf.mxu0  ;;  %v2039_v13 = vpack.i.bf16 %v1044_v4, %v1041_v61  ;;  %v2720_v2 = vsel %vm430_vm0, %v993_v46, %v994_v32 }
 0x177   : > { %v907_v36 = vadd.f32 %v2599_v19, %v892_v3 }
 0x178   : > { %v869_v5 = vpop.f32.mrf.mxu0 }
 0x179   : > { %v915_v14 = vmax.f32 %v907_v36, 0.0  ;;  %v893_v41 = vmul.f32 %v2594_v18, %v869_v5  ;;  %2030 = vrot.lane.b32.xlu1 %v2029_v12, %s2153_s20  ;;  %2040 = vrot.lane.b32.xlu0 %v2039_v13, %s2154_s23 }
 0x17a   : > { %v871_v27 = vpop.f32.mrf.mxu0 }
 0x17b   : > { %v933_v21 = vrot.slane %v915_v14, 7  ;;  %v908_v59 = vadd.f32 %v2599_v19, %v893_v41 }
 0x17d   : > { %v2709_v43 = vsel %vm946_vm8, 0.0, %v933_v21  ;;  %v961_v53 = vsel %vm946_vm8, %v933_v21, 0.0  ;;  %v916_v0 = vmax.f32 %v908_v59, 0.0  ;;  %2035 = vrot.lane.b32.xlu1 %v2034_v9, %s2155_s26 }
 0x17e   : > { %v997_v34 = vrot.slane %v961_v53, 1  ;;  %v1045_v35 = vrot.slane %v2709_v43, 2  ;;  %v1046_v38 = vrot.slane %v961_v53, 2  ;;  %v2044_v45 = vpack.i.bf16 %v2709_v43, %v2686_v7 }
 0x17f   : > { %v934_v49 = vrot.slane %v916_v0, 7  ;;  %v996_v51 = vrot.slane %v2709_v43, 1 }
 0x180   : > { %v1047_v52 = vsel %vm1029_vm9, %v1045_v35, %v1046_v38  ;;  %2045 = vrot.lane.b32.xlu0 %v2044_v45, %s2153_s20 }
 0x181   : > { %v2723_v1 = vsel %vm946_vm8, 0.0, %v934_v49  ;;  %v962_v56 = vsel %vm946_vm8, %v934_v49, 0.0  ;;  %v1251_v58 = vpack.c.bf16 %v1047_v52, %v1044_v4  ;;  %v874_v61 = vpop.f32.mrf.mxu0  ;;  %v2727_v39 = vsel %vm430_vm0, %v996_v51, %v997_v34 }
 0x182   : > { %v1049_v40 = vrot.slane %v962_v56, 2  ;;  %v894_v63 = vmul.f32 %v2594_v18, %v874_v61  ;;  %v2054_v30 = vpack.i.bf16 %v2727_v39, %v2720_v2  ;;  %v1048_v3 = vrot.slane %v2723_v1, 2 }
 0x183   : > { %1824 = vmatmul.mubr.msk.bf16.vlgmr.msra.gmra.mxu0 %vm670_vm2, %v1251_v58  ;;  %v876_v20 = vpop.f32.mrf.mxu0  ;;  %v2059_v13 = vpack.i.bf16 %v1047_v52, %v1044_v4  ;;  %v1000_v59 = vrot.slane %v962_v56, 1  ;;  %v999_v32 = vrot.slane %v2723_v1, 1  ;;  %v2064_v4 = vpack.i.bf16 %v2723_v1, %v2709_v43 }
 0x184   : > { %v909_v28 = vadd.f32 %v2599_v19, %v894_v63  ;;  %2055 = vrot.lane.b32.xlu1 %v2054_v30, %s2154_s23  ;;  %2050 = vrot.lane.b32.xlu0 %v2054_v30, %s2155_s26  ;;  %v2738_v36 = vsel %vm1029_vm9, %v1048_v3, %v1049_v40 }
 0x185   : > { %v877_v31 = vpop.f32.mrf.mxu0  ;;  %v2069_v14 = vpack.i.bf16 %v2738_v36, %v1047_v52  ;;  %v2759_v45 = vsel %vm430_vm0, %v999_v32, %v1000_v59 }
 0x186   : > { %v917_v5 = vmax.f32 %v909_v28, 0.0  ;;  %v895_v12 = vmul.f32 %v2594_v18, %v877_v31 }
 0x187   : > { %v879_v41 = vpop.f32.mrf.mxu0 }
 0x188   : > { %v935_v27 = vrot.slane %v917_v5, 7  ;;  %v910_v21 = vadd.f32 %v2599_v19, %v895_v12  ;;  %2060 = vrot.lane.b32.xlu1 %v2059_v13, %s2153_s20  ;;  %2070 = vrot.lane.b32.xlu0 %v2069_v14, %s2154_s23 }
 0x18a   : > { %v2747_v9 = vsel %vm946_vm8, 0.0, %v935_v27  ;;  %v963_v46 = vsel %vm946_vm8, %v935_v27, 0.0  ;;  %v918_v18 = vmax.f32 %v910_v21, 0.0 }
 0x18b   : > { %v1003_v53 = vrot.slane %v963_v46, 1  ;;  %v1052_v0 = vrot.slane %v963_v46, 2  ;;  %v2074_v19 = vpack.i.bf16 %v2747_v9, %v2723_v1  ;;  %v1002_v34 = vrot.slane %v2747_v9, 1 }
 0x18c   : > { %v936_v35 = vrot.slane %v918_v18, 7  ;;  %2065 = vrot.lane.b32.xlu1 %v2064_v4, %s2155_s26  ;;  %v1051_v38 = vrot.slane %v2747_v9, 2 }
 0x18d   : > { %2075 = vrot.lane.b32.xlu0 %v2074_v19, %s2153_s20  ;;  %v2762_v49 = vsel %vm430_vm0, %v1002_v34, %v1003_v53 }
 0x18e   : > { %v955_v51 = vsel %vm946_vm8, 0.0, %v936_v35  ;;  %v964_v52 = vsel %vm946_vm8, %v936_v35, 0.0  ;;  %v2084_v56 = vpack.i.bf16 %v2762_v49, %v2759_v45  ;;  %v2769_v61 = vsel %vm1029_vm9, %v1051_v38, %v1052_v0 }
 0x18f   : > { %v1116_v58 = vrot.slane %v964_v52, 2  ;;  %v1115_v40 = vrot.slane %v955_v51, 2  ;;  %v1254_v63 = vpack.c.bf16 %v2769_v61, %v2738_v36  ;;  %v2089_v30 = vpack.i.bf16 %v2769_v61, %v2738_v36 }
 0x190   : > { %2085 = vrot.lane.b32.xlu1 %v2084_v56, %s2154_s23  ;;  %v2094_v3 = vpack.i.bf16 %v2603_v25, %v955_v51  ;;  %v1105_v31 = vrot.slane %v964_v52, 1  ;;  %v1104_v5 = vrot.slane %v955_v51, 1  ;;  %v2109_v12 = vpack.i.bf16 %v955_v51, %v2747_v9 }
 0x191   : > { %2080 = vrot.lane.b32.xlu0 %v2084_v56, %s2155_s26  ;;  %v2778_v20 = vsel %vm1029_vm9, %v1115_v40, %v1116_v58 }
 0x192   : > { %v1257_v28 = vpack.c.bf16 %v2649_v33, %v2778_v20  ;;  %v2099_v13 = vpack.i.bf16 %v2778_v20, %v2769_v61  ;;  %v2790_v14 = vsel %vm430_vm0, %v1104_v5, %v1105_v31  ;;  %v2896_v20 = vld [vmem:[%s2946_s6] ss:$0 sm:$0xff] }
 0x193   : > { %v2104_v41 = vpack.i.bf16 %v2628_v55, %v2790_v14 }
 0x194   : > { %2090 = vrot.lane.b32.xlu1 %v2089_v30, %s2153_s20 }
 0x195   : > { %2095 = vrot.lane.b32.xlu0 %v2094_v3, %s2153_s20 }
 0x198   : > { %2110 = vrot.lane.b32.xlu1 %v2109_v12, %s2155_s26 }
 0x199   : > { %2100 = vrot.lane.b32.xlu0 %v2099_v13, %s2154_s23 }
 0x19c   : > { %1576 = vrot.lane.b32.xlu1 %v375_v16, %s2158_s15 }
 0x19d   : > { %2105 = vrot.lane.b32.xlu0 %v2104_v41, %s2155_s26 }
 0x1a0   : > { %1580 = vrot.lane.b32.xlu1 %v377_v24, %s2158_s15 }
 0x1a1   : > { %1574 = vrot.lane.b32.xlu0 %v374_v15, %s2158_s15 }
 0x1a4   : > { %1584 = vrot.lane.b32.xlu1 %v379_v29, %s2158_s15 }
 0x1a5   : > { %1578 = vrot.lane.b32.xlu0 %v376_v23, %s2158_s15 }
 0x1a8   : > { %1588 = vrot.lane.b32.xlu1 %v381_v10, %s2158_s15 }
 0x1a9   : > { %1582 = vrot.lane.b32.xlu0 %v378_v26, %s2158_s15 }
 0x1ad   : > { %1586 = vrot.lane.b32.xlu0 %v380_v22, %s2158_s15 }
 0x1db   : > { %v1996_v6 = vpop.permute.xlu1 %1995 }
 0x1dc   : > { %v1998_v16 = vunpack.i.h.bf16 %v1996_v6  ;;  %v1997_v23 = vunpack.i.l.bf16 %v1996_v6 }
 0x1de   : > { %v1199_v54 = vsel %vm670_vm2, %v2624_v57, %v1998_v16  ;;  %v1198_v17 = vsel %vm670_vm2, %v2603_v25, %v1997_v23 }
 0x1df   : > { %v2001_v11 = vpop.permute.xlu1 %2000  ;;  %v2011_v15 = vpop.permute.xlu0 %2010 }
 0x1e0   : > { %v2003_v55 = vunpack.i.h.bf16 %v2001_v11  ;;  %v2002_v62 = vunpack.i.l.bf16 %v2001_v11  ;;  %v2013_v21 = vunpack.i.h.bf16 %v2011_v15  ;;  %v2012_v26 = vunpack.i.l.bf16 %v2011_v15 }
 0x1e2   : > { %v1206_v22 = vsel %vm688_vm4, %v1198_v17, %v2002_v62  ;;  %v1207_v10 = vsel %vm688_vm4, %v1199_v54, %v2003_v55  ;;  %v1222_v0 = vsel %vm670_vm2, %v2640_v50, %v2012_v26  ;;  %v1223_v19 = vsel %vm670_vm2, %v2683_v48, %v2013_v21 }
 0x1e3   : > { %v2006_v24 = vpop.permute.xlu1 %2005  ;;  %v2016_v27 = vpop.permute.xlu0 %2015 }
 0x1e4   : > { %v2008_v59 = vunpack.i.h.bf16 %v2006_v24  ;;  %v2007_v60 = vunpack.i.l.bf16 %v2006_v24  ;;  %v2018_v29 = vunpack.i.h.bf16 %v2016_v27  ;;  %v2017_v32 = vunpack.i.l.bf16 %v2016_v27 }
 0x1e6   : > { %v1230_v34 = vsel %vm688_vm4, %v1222_v0, %v2017_v32  ;;  %v1231_v57 = vsel %vm688_vm4, %v1223_v19, %v2018_v29  ;;  %v1214_v25 = vsel %vm706_vm6, %v1206_v22, %v2007_v60  ;;  %v1215_v35 = vsel %vm706_vm6, %v1207_v10, %v2008_v59 }
 0x1e7   : > { %v2026_v46 = vpop.permute.xlu1 %2025  ;;  %v2021_v18 = vpop.permute.xlu0 %2020  ;;  %v1246_v58 = vpack.c.bf16 %v1215_v35, %v1214_v25 }
 0x1e8   : > { %v2023_v4 = vunpack.i.h.bf16 %v2021_v18  ;;  %v2022_v53 = vunpack.i.l.bf16 %v2021_v18  ;;  %v2028_v50 = vunpack.i.h.bf16 %v2026_v46  ;;  %v2027_v48 = vunpack.i.l.bf16 %v2026_v46 }
 0x1ea   : > { %v1238_v38 = vsel %vm706_vm6, %v1230_v34, %v2022_v53  ;;  %v1239_v51 = vsel %vm706_vm6, %v1231_v57, %v2023_v4  ;;  %v1201_v16 = vsel %vm670_vm2, %v2669_v37, %v2028_v50 }
 0x1eb   : > { %v2031_v52 = vpop.permute.xlu1 %2030  ;;  %v1247_v56 = vpack.c.bf16 %v1239_v51, %v1238_v38  ;;  %v2041_v40 = vpop.permute.xlu0 %2040 }
 0x1ec   : > { %v2033_v31 = vunpack.i.h.bf16 %v2031_v52  ;;  %v2032_v5 = vunpack.i.l.bf16 %v2031_v52  ;;  %v2043_v12 = vunpack.i.h.bf16 %v2041_v40  ;;  %v2042_v13 = vunpack.i.l.bf16 %v2041_v40 }
 0x1ed   : > { %1446 = vmatprep.mubr.bf16.mxu1 %v1247_v56 }
 0x1ee   : > { %1447 = vmatmul.mubr.bf16.vlgmr.msra.gmra.mxu1 %v1246_v58  ;;  %v1209_v62 = vsel %vm688_vm4, %v1201_v16, %v2033_v31  ;;  %v1224_v27 = vsel %vm670_vm2, %v2690_v44, %v2042_v13 }
 0x1ef   : > { %1833 = vmatpush3.bf16.msra.mxu1 %v2556_v47  ;;  %v2036_v30 = vpop.permute.xlu1 %2035  ;;  %v1200_v47 = vsel %vm670_vm2, %v2643_v8, %v2027_v48 }
 0x1f0   : > { %1832 = vmatprep.subr.bf16.mxu1 %v2563_v42  ;;  %v2038_v41 = vunpack.i.h.bf16 %v2036_v30  ;;  %v2037_v6 = vunpack.i.l.bf16 %v2036_v30  ;;  %v1208_v55 = vsel %vm688_vm4, %v1200_v47, %v2032_v5 }
 0x1f2   : > { %v2046_v3 = vpop.permute.xlu0 %2045  ;;  %v1216_v8 = vsel %vm706_vm6, %v1208_v55, %v2037_v6  ;;  %v1217_v60 = vsel %vm706_vm6, %v1209_v62, %v2038_v41 }
 0x1f3   : > { %1834 = vmatpush3.bf16.msra.mxu1 %v2563_v42  ;;  %v2048_v11 = vunpack.i.h.bf16 %v2046_v3  ;;  %v2047_v15 = vunpack.i.l.bf16 %v2046_v3  ;;  %v1225_v42 = vsel %vm670_vm2, %v2720_v2, %v2043_v12  ;;  %v1249_v22 = vpack.c.bf16 %v1217_v60, %v1216_v8 }
 0x1f5   : > { %v1233_v59 = vsel %vm688_vm4, %v1225_v42, %v2048_v11  ;;  %v1232_v37 = vsel %vm688_vm4, %v1224_v27, %v2047_v15 }
 0x1f6   : > { %v2056_v23 = vpop.permute.xlu1 %2055  ;;  %v2051_v24 = vpop.permute.xlu0 %2050 }
 0x1f7   : > { %v2053_v21 = vunpack.i.h.bf16 %v2051_v24  ;;  %v2052_v26 = vunpack.i.l.bf16 %v2051_v24  ;;  %v2058_v2 = vunpack.i.h.bf16 %v2056_v23  ;;  %v2057_v10 = vunpack.i.l.bf16 %v2056_v23 }
 0x1f9   : > { %v1240_v32 = vsel %vm706_vm6, %v1232_v37, %v2052_v26  ;;  %v1241_v54 = vsel %vm706_vm6, %v1233_v59, %v2053_v21  ;;  %v1203_v38 = vsel %vm670_vm2, %v2709_v43, %v2058_v2  ;;  %v1202_v51 = vsel %vm670_vm2, %v2686_v7, %v2057_v10 }
 0x1fa   : > { %v2061_v29 = vpop.permute.xlu1 %2060  ;;  %v2071_v17 = vpop.permute.xlu0 %2070  ;;  %v1250_v44 = vpack.c.bf16 %v1241_v54, %v1240_v32 }
 0x1fb   : > { %v2063_v18 = vunpack.i.h.bf16 %v2061_v29  ;;  %v2062_v4 = vunpack.i.l.bf16 %v2061_v29  ;;  %v2073_v0 = vunpack.i.h.bf16 %v2071_v17  ;;  %v2072_v19 = vunpack.i.l.bf16 %v2071_v17 }
 0x1fc   : > { %1454 = vmatprep.mubr.bf16.mxu1 %v1250_v44 }
 0x1fd   : > { %1455 = vmatmul.mubr.bf16.gmra.mxu1 %v1249_v22  ;;  %v1210_v56 = vsel %vm688_vm4, %v1202_v51, %v2062_v4  ;;  %v1211_v58 = vsel %vm688_vm4, %v1203_v38, %v2063_v18  ;;  %v1226_v50 = vsel %vm670_vm2, %v2727_v39, %v2072_v19  ;;  %v1227_v48 = vsel %vm670_vm2, %v2759_v45, %v2073_v0 }
 0x1fe   : > { %v2066_v46 = vpop.permute.xlu1 %2065 }
 0x1ff   : > { %v2076_v53 = vpop.permute.xlu0 %2075  ;;  %v2068_v34 = vunpack.i.h.bf16 %v2066_v46  ;;  %v2067_v57 = vunpack.i.l.bf16 %v2066_v46 }
 0x200   : > { %v2078_v25 = vunpack.i.h.bf16 %v2076_v53  ;;  %v2077_v35 = vunpack.i.l.bf16 %v2076_v53 }
 0x201   : > { %v1218_v7 = vsel %vm706_vm6, %v1210_v56, %v2067_v57  ;;  %v1219_v5 = vsel %vm706_vm6, %v1211_v58, %v2068_v34 }
 0x202   : > { %v2086_v52 = vpop.permute.xlu1 %2085  ;;  %v1235_v31 = vsel %vm688_vm4, %v1227_v48, %v2078_v25  ;;  %v1234_v43 = vsel %vm688_vm4, %v1226_v50, %v2077_v35  ;;  %v1252_v11 = vpack.c.bf16 %v1219_v5, %v1218_v7  ;;  %v2890_v25 = vld [vmem:[%s2945_s5] ss:$0 sm:$0xff] }
 0x203   : > { %v2081_v40 = vpop.permute.xlu0 %2080  ;;  %v2088_v15 = vunpack.i.h.bf16 %v2086_v52  ;;  %v2087_v16 = vunpack.i.l.bf16 %v2086_v52 }
 0x204   : > { %v2083_v30 = vunpack.i.h.bf16 %v2081_v40  ;;  %v2082_v3 = vunpack.i.l.bf16 %v2081_v40 }
 0x205   : > { %v1205_v59 = vsel %vm670_vm2, %v2747_v9, %v2088_v15  ;;  %v1204_v37 = vsel %vm670_vm2, %v2723_v1, %v2087_v16 }
 0x206   : > { %v2091_v12 = vpop.permute.xlu1 %2090  ;;  %v1242_v13 = vsel %vm706_vm6, %v1234_v43, %v2082_v3  ;;  %v1243_v41 = vsel %vm706_vm6, %v1235_v31, %v2083_v30 }
 0x207   : > { %v2096_v6 = vpop.permute.xlu0 %2095  ;;  %v1253_v39 = vpack.c.bf16 %v1243_v41, %v1242_v13  ;;  %v2093_v23 = vunpack.i.h.bf16 %v2091_v12  ;;  %v2092_v55 = vunpack.i.l.bf16 %v2091_v12 }
 0x208   : > { %v2098_v8 = vunpack.i.h.bf16 %v2096_v6  ;;  %v2097_v60 = vunpack.i.l.bf16 %v2096_v6 }
 0x209   : > { %1462 = vmatprep.mubr.bf16.mxu1 %v1253_v39  ;;  %v1212_v32 = vsel %vm688_vm4, %v1204_v37, %v2092_v55  ;;  %v1213_v54 = vsel %vm688_vm4, %v1205_v59, %v2093_v23 }
 0x20a   : > { %1463 = vmatmul.mubr.bf16.gmra.mxu1 %v1252_v11  ;;  %v2111_v45 = vpop.permute.xlu1 %2110 }
 0x20b   : > { %v2101_v47 = vpop.permute.xlu0 %2100  ;;  %v2113_v27 = vunpack.i.h.bf16 %v2111_v45  ;;  %v2112_v42 = vunpack.i.l.bf16 %v2111_v45 }
 0x20c   : > { %v2103_v62 = vunpack.i.h.bf16 %v2101_v47  ;;  %v2102_v24 = vunpack.i.l.bf16 %v2101_v47 }
 0x20d   : > { %v1221_v9 = vsel %vm706_vm6, %v1213_v54, %v2113_v27 }
 0x20e   : > { %v1228_v21 = vsel %vm670_vm2, %v2762_v49, %v2102_v24  ;;  %v1229_v26 = vsel %vm670_vm2, %v2790_v14, %v2103_v62  ;;  %v1220_v14 = vsel %vm706_vm6, %v1212_v32, %v2112_v42 }
 0x20f   : > { %v2106_v29 = vpop.permute.xlu0 %2105  ;;  %v1236_v49 = vsel %vm688_vm4, %v1228_v21, %v2097_v60  ;;  %v1237_v22 = vsel %vm688_vm4, %v1229_v26, %v2098_v8  ;;  %v1255_v46 = vpack.c.bf16 %v1221_v9, %v1220_v14 }
 0x210   : > { %v2108_v17 = vunpack.i.h.bf16 %v2106_v29  ;;  %v2107_v44 = vunpack.i.l.bf16 %v2106_v29 }
 0x212   : > { %v1244_v2 = vsel %vm706_vm6, %v1236_v49, %v2107_v44  ;;  %v1245_v1 = vsel %vm706_vm6, %v1237_v22, %v2108_v17 }
 0x213   : > { %v1256_v10 = vpack.c.bf16 %v1245_v1, %v1244_v2  ;;  %v1575_v19 = vpop.permute.xlu0 %1574 }
 0x214   : > { %v1599_v33 = vsel %vm1598_vm10, 0.0, %v1575_v19 }
 0x215   : > { %1470 = vmatprep.mubr.bf16.mxu1 %v1256_v10  ;;  %v1608_v52 = vsel %vm1607_vm11, %v1599_v33, 0.0 }
 0x216   : > { %1471 = vmatmul.mubr.bf16.gmra.mxu1 %v1255_v46 }
 0x217   : > { %1827 = vmatprep.mubr.msk.bf16.mxu1 %vm670_vm2, %v1254_v63  ;;  %v1579_v13 = vpop.permute.xlu0 %1578 }
 0x218   : > { %v1601_v11 = vsel %vm1598_vm10, 0.0, %v1579_v13 }
 0x219   : > { %v1610_v23 = vsel %vm1607_vm11, %v1601_v11, 0.0 }
 0x21b   : > { %v1583_v14 = vpop.permute.xlu0 %1582 }
 0x21c   : > { %v1603_v46 = vsel %vm1598_vm10, 0.0, %v1583_v14 }
 0x21e   : > { %1828 = vmatmul.mubr.msk.bf16.vlgmr.msra.gmra.mxu1 %vm670_vm2, %v1257_v28  ;;  %v1577_v28 = vpop.permute.xlu1 %1576 }
 0x21f   : > { %v1600_v58 = vsel %vm1598_vm10, 0.0, %v1577_v28  ;;  %v1587_v33 = vpop.permute.xlu0 %1586 }
 0x220   : > { %v1609_v30 = vsel %vm1607_vm11, %v1600_v58, 0.0 }
 0x222   : > { %v1581_v15 = vpop.permute.xlu1 %1580 }
 0x223   : > { %v1602_v24 = vsel %vm1598_vm10, 0.0, %v1581_v15 }
 0x224   : > { %v1611_v21 = vsel %vm1607_vm11, %v1602_v24, 0.0 }
 0x243   : > { %v1825_v18 = vpop.f32.mrf.mxu0 }
 0x245   : > { %v1513_v4 = vpop.f32.mrf.mxu0 }
 0x247   : > { %v1826_v57 = vpop.f32.mrf.mxu0 }
 0x249   : > { %v1516_v51 = vpop.f32.mrf.mxu0 }
 0x2ae   : > { %v1789_v53 = vpop.f32.mrf.mxu1 }
 0x2b0   : > { %v1790_v0 = vpop.f32.mrf.mxu1 }
 0x2b1   : > { %v1791_v34 = vadd.f32 %v1790_v0, %v1789_v53  ;;  %v1585_v53 = vpop.permute.xlu1 %1584 }
 0x2b2   : > { %v1792_v36 = vpop.f32.mrf.mxu1 }
 0x2b3   : > { %v1514_v61 = vadd.f32 %v1791_v34, %v1513_v4 }
 0x2b4   : > { %v1793_v63 = vpop.f32.mrf.mxu1 }
 0x2b5   : > { %v1551_v35 = vmul.f32 %v2890_v25, %v1514_v61  ;;  %v1794_v38 = vadd.f32 %v1793_v63, %v1792_v36  ;;  %v1612_v36 = vsel %vm1607_vm11, %v1603_v46, 0.0  ;;  %v1604_v61 = vsel %vm1598_vm10, 0.0, %v1585_v53 }
 0x2b7   : > { %v1517_v56 = vadd.f32 %v1794_v38, %v1516_v51  ;;  %v1566_v40 = vadd.f32 %v2896_v20, %v1551_v35 }
 0x2b9   : > { %v1552_v50 = vmul.f32 %v2890_v25, %v1517_v56  ;;  %v1616_v48 = vadd.f32 %v1608_v52, %v1566_v40  ;;  %v1605_v52 = vsel %vm1598_vm10, 0.0, %v1587_v33  ;;  %v1613_v40 = vsel %vm1607_vm11, %v1604_v61, 0.0 }
 0x2bb   : > { %v1567_v3 = vadd.f32 %v2896_v20, %v1552_v50  ;;  %v1624_v31 = vmax.f32 %v1616_v48, 0.0  ;;  %v1589_v50 = vpop.permute.xlu1 %1588 }
 0x2bd   : > { %v1617_v43 = vadd.f32 %v1609_v30, %v1567_v3  ;;  %v1795_v7 = vpop.f32.mrf.mxu1  ;;  %1632 = vxpose.xlu0.b32.start [1/8] (short) (narrow) %v1624_v31, 32 }
 0x2bf   : > { %v1625_v5 = vmax.f32 %v1617_v43, 0.0  ;;  %v1796_v12 = vpop.f32.mrf.mxu1  ;;  %v1614_v43 = vsel %vm1607_vm11, %v1605_v52, 0.0 }
 0x2c0   : > { %v1797_v41 = vadd.f32 %v1796_v12, %v1795_v7  ;;  %v1606_v7 = vsel %vm1598_vm10, 0.0, %v1589_v50 }
 0x2c1   : > { %v1798_v6 = vpop.f32.mrf.mxu1  ;;  %1633 = vxpose.xlu0.b32.cont [2/8] (short) (narrow) %v1625_v5, 32 }
 0x2c2   : > { %v1522_v39 = vadd.f32 %v1825_v18, %v1797_v41 }
 0x2c3   : > { %v1799_v45 = vpop.f32.mrf.mxu1 }
 0x2c4   : > { %v1553_v16 = vmul.f32 %v2890_v25, %v1522_v39  ;;  %v1800_v47 = vadd.f32 %v1799_v45, %v1798_v6  ;;  %v1615_v6 = vsel %vm1607_vm11, %v1606_v7, 0.0 }
 0x2c6   : > { %v1525_v55 = vadd.f32 %v1826_v57, %v1800_v47  ;;  %v1568_v62 = vadd.f32 %v2896_v20, %v1553_v16 }
 0x2c8   : > { %v1554_v27 = vmul.f32 %v2890_v25, %v1525_v55  ;;  %v1618_v42 = vadd.f32 %v1610_v23, %v1568_v62 }
 0x2ca   : > { %v1801_v26 = vpop.f32.mrf.mxu1  ;;  %v1626_v59 = vmax.f32 %v1618_v42, 0.0  ;;  %v1569_v37 = vadd.f32 %v2896_v20, %v1554_v27 }
 0x2cc   : > { %v1802_v8 = vpop.f32.mrf.mxu1  ;;  %v1619_v60 = vadd.f32 %v1611_v21, %v1569_v37  ;;  %1634 = vxpose.xlu0.b32.cont [3/8] (short) (narrow) %v1626_v59, 32 }
 0x2cd   : > { %v1803_v2 = vadd.f32 %v1802_v8, %v1801_v26 }
 0x2ce   : > { %v1627_v29 = vmax.f32 %v1619_v60, 0.0  ;;  %v1804_v32 = vpop.f32.mrf.mxu1 }
 0x2d0   : > { %1635 = vxpose.xlu0.b32.cont [4/8] (short) (narrow) %v1627_v29, 32  ;;  %v1805_v54 = vpop.f32.mrf.mxu1 }
 0x2d1   : > { %v1806_v19 = vadd.f32 %v1805_v54, %v1804_v32 }
 0x2d6   : > { %v1807_v17 = vpop.f32.mrf.mxu1 }
 0x2d8   : > { %v1808_v44 = vpop.f32.mrf.mxu1 }
 0x2d9   : > { %v1809_v1 = vadd.f32 %v1808_v44, %v1807_v17 }
 0x2da   : > { %v1810_v49 = vpop.f32.mrf.mxu1 }
 0x2dc   : > { %v1811_v22 = vpop.f32.mrf.mxu1 }
 0x2dd   : > { %v1812_v34 = vadd.f32 %v1811_v22, %v1810_v49 }
 0x2de   : > { %v1829_v9 = vpop.f32.mrf.mxu1 }
 0x2df   : > { %v1538_v18 = vadd.f32 %v1829_v9, %v1809_v1 }
 0x2e0   : > { %v1529_v10 = vpop.f32.mrf.mxu1 }
 0x2e1   : > { %v1530_v4 = vadd.f32 %v1803_v2, %v1529_v10  ;;  %v1557_v28 = vmul.f32 %v2890_v25, %v1538_v18 }
 0x2e2   : > { %v1830_v0 = vpop.f32.mrf.mxu1 }
 0x2e3   : > { %v1555_v57 = vmul.f32 %v2890_v25, %v1530_v4  ;;  %v1541_v38 = vadd.f32 %v1830_v0, %v1812_v34  ;;  %v1572_v48 = vadd.f32 %v2896_v20, %v1557_v28 }
 0x2e4   : > { %v1532_v63 = vpop.f32.mrf.mxu1 }
 0x2e5   : > { %v1570_v35 = vadd.f32 %v2896_v20, %v1555_v57  ;;  %v1533_v51 = vadd.f32 %v1806_v19, %v1532_v63  ;;  %v1558_v30 = vmul.f32 %v2890_v25, %v1541_v38  ;;  %v1622_v12 = vadd.f32 %v1614_v43, %v1572_v48 }
 0x2e7   : > { %v1556_v56 = vmul.f32 %v2890_v25, %v1533_v51  ;;  %v1620_v58 = vadd.f32 %v1612_v36, %v1570_v35  ;;  %v1573_v13 = vadd.f32 %v2896_v20, %v1558_v30  ;;  %v1630_v39 = vmax.f32 %v1622_v12, 0.0 }
 0x2e9   : > { %v1571_v3 = vadd.f32 %v2896_v20, %v1556_v56  ;;  %v1628_v31 = vmax.f32 %v1620_v58, 0.0  ;;  %v1623_v11 = vadd.f32 %v1615_v6, %v1573_v13 }
 0x2eb   : > { %1636 = vxpose.xlu0.b32.cont [5/8] (short) (narrow) %v1628_v31, 32  ;;  %v1621_v5 = vadd.f32 %v1613_v40, %v1571_v3  ;;  %v1631_v25 = vmax.f32 %v1623_v11, 0.0 }
 0x2ed   : > { %v1629_v41 = vmax.f32 %v1621_v5, 0.0 }
 0x2ef   : > { %1637 = vxpose.xlu0.b32.cont [6/8] (short) (narrow) %v1629_v41, 32 }
 0x2f3   : > { %1638 = vxpose.xlu0.b32.cont [7/8] (short) (narrow) %v1630_v39, 32 }
 0x2f7   : > { %1639 = vxpose.xlu0.b32.end [8/8] (short) (narrow) %v1631_v25, 32 }
 0x357   : > { %v1648_v45 = vpop.trf.xlu0 }
 0x358   : > { %1664 = vst.msk [vmem:[%s278_s21] sm:$0xff] %vm688_vm4, %v1648_v45 }
 0x35b   : > { %v1649_v15 = vpop.trf.xlu0 }
 0x35c   : > { %1665 = vst.msk [vmem:[%s278_s21 + $0x8] sm:$0xff] %vm688_vm4, %v1649_v15 }
 0x35f   : > { %v1650_v20 = vpop.trf.xlu0 }
 0x360   : > { %1666 = vst.msk [vmem:[%s278_s21 + $0x10] sm:$0xff] %vm688_vm4, %v1650_v20 }
 0x363   : > { %v1651_v16 = vpop.trf.xlu0 }
 0x364   : > { %1667 = vst.msk [vmem:[%s278_s21 + $0x18] sm:$0xff] %vm688_vm4, %v1651_v16 }
 0x365 PF: > { %s17_s24 = sadd.s32 1, %s2147_s24  }
 0x366   : > { %p14_p4 = scmp.ge.s32.totalorder %s17_s24, 4  }
 0x368   :  { %16 = sbr.rel (!%p14_p4) target bundleno = 1 (0x1), region = 78 }

</bundles_post_ra>
